<compile_context>
chip_gen: v6e
topology: v6e:2x2x1
jax: 0.10.0
libtpu: 0.0.40
codegen_flags: <defaults>
</compile_context>

<pallas_src>
import functools

import numpy as np
import jax
import jax.numpy as jnp
from jax.experimental import pallas as pl
from jax.experimental.pallas import tpu as pltpu


# ----------------------------- Pallas kernel ------------------------------- #
def teacher_fwd_kernel(x_ref, w_ref, b_ref, o_ref, *, features, hidden):
    D, H = features, hidden
    x = x_ref[...]                               # (Bt, D)

    # Hoisted parameter views (loaded once, reused by every unrolled iteration).
    w0 = w_ref[0:D, :]                           # (D, H)  initial masked linear
    w1a = w_ref[D:D + H, :]                      # (H, H)  residual block 1
    w1b = w_ref[D + H:D + 2 * H, :]
    w2a = w_ref[D + 2 * H:D + 3 * H, :]          # (H, H)  residual block 2
    w2b = w_ref[D + 3 * H:D + 4 * H, :]
    wh = w_ref[D + 4 * H:D + 5 * H, :]           # (H, H)  fused head: cols [0:2D] = [scale|shift], rest 0

    b = b_ref[...]                               # (8, H) bias / constants slab
    b0 = b[0:1, :]
    b1a = b[1:2, :]
    b1b = b[2:3, :]
    b2a = b[3:4, :]
    b2b = b[4:5, :]
    bh = b[5:6, :]                               # fused head bias (zero-padded)
    s0 = b[6:7, 0:D]                             # shift of iteration 0 (MADE on zeros)
    inv_scale0 = b[7:8, 0:D]                     # 1/scale of iteration 0

    def made(y):
        # initial masked linear
        h = jnp.dot(y, w0, preferred_element_type=jnp.float32) + b0
        # masked residual block 1
        t = jnp.maximum(h, 0.0)
        t = jnp.dot(t, w1a, preferred_element_type=jnp.float32) + b1a
        t = jnp.maximum(t, 0.0)
        t = jnp.dot(t, w1b, preferred_element_type=jnp.float32) + b1b
        h = h + t
        # masked residual block 2
        t = jnp.maximum(h, 0.0)
        t = jnp.dot(t, w2a, preferred_element_type=jnp.float32) + b2a
        t = jnp.maximum(t, 0.0)
        t = jnp.dot(t, w2b, preferred_element_type=jnp.float32) + b2b
        h = h + t
        # fused output head: one matmul, then static split into (scale, shift)
        ho = jnp.dot(h, wh, preferred_element_type=jnp.float32) + bh   # (Bt, H)
        return ho[:, 0:D], ho[:, D:2 * D]

    # Iteration 0 is input-independent (MADE evaluated on zeros): precomputed.
    z = (x - s0) * inv_scale0

    # Remaining D-1 autoregressive iterations, fully unrolled (D is static),
    # giving the LLO scheduler visibility across the serial MXU chain.
    for _ in range(D - 1):
        u, s = made(z)
        scale = 1.0 / (1.0 + jnp.exp(-(u + 2.0))) + 1e-3     # sigmoid(u+2)+1e-3
        z = (x - s) * pl.reciprocal(scale, approx=False)

    o_ref[...] = z


# --------------------------------- wrapper ---------------------------------- #
def teacher_forward(x, wslab, bslab, *, block_b=None):
    B, D = x.shape
    H = wslab.shape[1]
    kernel = functools.partial(teacher_fwd_kernel, features=D, hidden=H)
    out_shape = jax.ShapeDtypeStruct((B, D), jnp.float32)

    if block_b is None:
        # Small batches: gridless whole-VMEM call (zero per-step overhead).
        # Large multiples of 128: batch grid -> megacore sharding on v7x.
        block_b = 128 if (B > 128 and B % 128 == 0) else B

    if block_b >= B:
        z = pl.pallas_call(
            kernel,
            out_shape=out_shape,
            in_specs=[pl.BlockSpec(memory_space=pltpu.MemorySpace.VMEM)] * 3,
            out_specs=pl.BlockSpec(memory_space=pltpu.MemorySpace.VMEM),
        )(x, wslab, bslab)
    else:
        z = pl.pallas_call(
            kernel,
            out_shape=out_shape,
            grid=(B // block_b,),
            in_specs=[
                pl.BlockSpec((block_b, D), lambda i: (i, 0)),
                pl.BlockSpec(wslab.shape, lambda i: (0, 0)),   # weights resident
                pl.BlockSpec(bslab.shape, lambda i: (0, 0)),
            ],
            out_specs=pl.BlockSpec((block_b, D), lambda i: (i, 0)),
            compiler_params=pltpu.CompilerParams(
                dimension_semantics=("parallel",)),
        )(x, wslab, bslab)

    # ReversePermutation.inverse == feature-axis flip: pure layout work, done
    # in the wrapper instead of an in-kernel matmul with a permutation matrix.
    return z[:, ::-1]


# -------------------------- parameter construction ------------------------- #
def init_teacher_params(key, features, hidden_features):
    """Raw MADE parameters, pre-masked and transposed to (in, out) layout."""
    D, H = features, hidden_features
    in_deg = np.arange(1, D + 1)
    # NOTE: degenerates when D == 1 (host-side construction only).
    hid_deg = np.arange(H) % max(1, D - 1) + min(1, D - 1)
    mask_in = (hid_deg[:, None] >= in_deg[None, :]).astype(np.float32)   # (H, D)
    mask_hh = (hid_deg[:, None] >= hid_deg[None, :]).astype(np.float32)  # (H, H)
    mask_out = (in_deg[:, None] > hid_deg[None, :]).astype(np.float32)   # (D, H)

    ks = jax.random.split(key, 14)

    def u(k, shape, fan_in):
        bound = 1.0 / np.sqrt(fan_in)
        return jax.random.uniform(k, shape, jnp.float32, -bound, bound)

    W0 = u(ks[0], (H, D), D) * mask_in
    b0 = u(ks[1], (1, H), D)
    W1a = u(ks[2], (H, H), H) * mask_hh
    b1a = u(ks[3], (1, H), H)
    W1b = u(ks[4], (H, H), H) * mask_hh * 1e-3   # residual-block near-zero init
    b1b = u(ks[5], (1, H), H) * 1e-3
    W2a = u(ks[6], (H, H), H) * mask_hh
    b2a = u(ks[7], (1, H), H)
    W2b = u(ks[8], (H, H), H) * mask_hh * 1e-3
    b2b = u(ks[9], (1, H), H) * 1e-3
    Ws = u(ks[10], (D, H), H) * mask_out         # unconstrained-scale head
    bs = u(ks[11], (1, D), H)
    Wt = u(ks[12], (D, H), H) * mask_out         # shift head
    bt = u(ks[13], (1, D), H)

    return (W0.T, b0, W1a.T, b1a, W1b.T, b1b, W2a.T, b2a, W2b.T, b2b,
            Ws.T, bs, Wt.T, bt)


def pack_teacher_params(raw, features, hidden_features):
    """Pack the 14 raw params into a weight slab and a bias/constants slab."""
    D, H = features, hidden_features
    assert H >= 2 * D, "packing assumes the fused head (2*D lanes) fits in H lanes"
    (w0, b0, w1a, b1a, w1b, b1b, w2a, b2a, w2b, b2b, ws, bs, wt, bt) = raw

    def pad_lanes(a):
        return jnp.pad(a, ((0, 0), (0, H - a.shape[1])))

    # Fused scale/shift head: one (H, 2D) matmul instead of two (H, D) matmuls.
    whead = pad_lanes(jnp.concatenate([ws, wt], axis=1))              # (H, H)
    bhead = pad_lanes(jnp.concatenate([bs, bt], axis=1))              # (1, H)
    wslab = jnp.concatenate([w0, w1a, w1b, w2a, w2b, whead], axis=0)  # (D+5H, H)

    # Iteration 0 of the autoregressive solve only depends on the parameters
    # (MADE evaluated on zeros) -> precompute its shift and reciprocal scale.
    h = b0
    t = jnp.maximum(h, 0.0) @ w1a + b1a
    t = jnp.maximum(t, 0.0) @ w1b + b1b
    h = h + t
    t = jnp.maximum(h, 0.0) @ w2a + b2a
    t = jnp.maximum(t, 0.0) @ w2b + b2b
    h = h + t
    u0 = h @ ws + bs
    s0 = h @ wt + bt
    scale0 = 1.0 / (1.0 + jnp.exp(-(u0 + 2.0))) + 1e-3
    inv_scale0 = 1.0 / scale0

    bslab = jnp.concatenate(
        [b0, b1a, b1b, b2a, b2b, bhead, pad_lanes(s0), pad_lanes(inv_scale0)],
        axis=0)                                                       # (8, H)
    return wslab.astype(jnp.float32), bslab.astype(jnp.float32)


# ---------------------------- pure-JAX reference ---------------------------- #
def teacher_ref(x, raw):
    (w0, b0, w1a, b1a, w1b, b1b, w2a, b2a, w2b, b2b, ws, bs, wt, bt) = raw

    def made(y):
        h = y @ w0 + b0
        t = jnp.maximum(h, 0.0) @ w1a + b1a
        t = jnp.maximum(t, 0.0) @ w1b + b1b
        h = h + t
        t = jnp.maximum(h, 0.0) @ w2a + b2a
        t = jnp.maximum(t, 0.0) @ w2b + b2b
        h = h + t
        return h @ ws + bs, h @ wt + bt

    z = jnp.zeros_like(x)
    for _ in range(x.shape[-1]):
        u_sc, sh = made(z)
        scale = 1.0 / (1.0 + jnp.exp(-(u_sc + 2.0))) + 1e-3
        z = (x - sh) / scale
    return z[:, ::-1]


# ---------------------------------- main ------------------------------------ #
if __name__ == "__main__":
    D, H = 8, 32                # features, hidden_features (n_layers = 1)
    key = jax.random.PRNGKey(0)
    kx, kp, kx2 = jax.random.split(key, 3)

    raw = init_teacher_params(kp, D, H)
    wslab, bslab = pack_teacher_params(raw, D, H)

    # --- small batch: gridless whole-VMEM path ---
    B = 8
    x = jax.random.normal(kx, (B, D), dtype=jnp.float32)
    out = jax.block_until_ready(teacher_forward(x, wslab, bslab))
    ref = teacher_ref(x, raw)
    assert out.shape == (B, D) and out.dtype == jnp.float32
    np.testing.assert_allclose(np.asarray(out), np.asarray(ref), rtol=1e-5, atol=1e-5)

    # --- larger batch: batch-grid path (weights replicated, "parallel" axis) ---
    B2 = 256
    x2 = jax.random.normal(kx2, (B2, D), dtype=jnp.float32)
    out2 = jax.block_until_ready(teacher_forward(x2, wslab, bslab))
    ref2 = teacher_ref(x2, raw)
    assert out2.shape == (B2, D) and out2.dtype == jnp.float32
    np.testing.assert_allclose(np.asarray(out2), np.asarray(ref2), rtol=1e-5, atol=1e-5)

    print("KERNEL_OK")
</pallas_src>

<mosaic_0001>
module attributes {stable_mosaic.version = 11 : i64} {
  func.func @teacher_fwd_kernel(%arg0: memref<8x8xf32, #tpu.memory_space<vmem>>, %arg1: memref<168x32xf32, #tpu.memory_space<vmem>>, %arg2: memref<8x32xf32, #tpu.memory_space<vmem>>, %arg3: memref<8x8xf32, #tpu.memory_space<vmem>>) attributes {dimension_semantics = [], scalar_prefetch = 0 : i64, scratch_operands = 0 : i64, tpu.core_type = #tpu.core_type<tc>} {
    %c0 = arith.constant 0 : index
    %c0_0 = arith.constant 0 : index
    %0 = vector.load %arg0[%c0, %c0_0] : memref<8x8xf32, #tpu.memory_space<vmem>>, vector<8x8xf32>
    %c0_1 = arith.constant 0 : index
    %c0_2 = arith.constant 0 : index
    %1 = vector.load %arg1[%c0_1, %c0_2] : memref<168x32xf32, #tpu.memory_space<vmem>>, vector<8x32xf32>
    %c8 = arith.constant 8 : index
    %c0_3 = arith.constant 0 : index
    %2 = vector.load %arg1[%c8, %c0_3] : memref<168x32xf32, #tpu.memory_space<vmem>>, vector<32x32xf32>
    %c40 = arith.constant 40 : index
    %c0_4 = arith.constant 0 : index
    %3 = vector.load %arg1[%c40, %c0_4] : memref<168x32xf32, #tpu.memory_space<vmem>>, vector<32x32xf32>
    %c72 = arith.constant 72 : index
    %c0_5 = arith.constant 0 : index
    %4 = vector.load %arg1[%c72, %c0_5] : memref<168x32xf32, #tpu.memory_space<vmem>>, vector<32x32xf32>
    %c104 = arith.constant 104 : index
    %c0_6 = arith.constant 0 : index
    %5 = vector.load %arg1[%c104, %c0_6] : memref<168x32xf32, #tpu.memory_space<vmem>>, vector<32x32xf32>
    %c136 = arith.constant 136 : index
    %c0_7 = arith.constant 0 : index
    %6 = vector.load %arg1[%c136, %c0_7] : memref<168x32xf32, #tpu.memory_space<vmem>>, vector<32x32xf32>
    %c0_8 = arith.constant 0 : index
    %c0_9 = arith.constant 0 : index
    %7 = vector.load %arg2[%c0_8, %c0_9] : memref<8x32xf32, #tpu.memory_space<vmem>>, vector<8x32xf32>
    %8 = vector.extract_strided_slice %7 {offsets = [0, 0], sizes = [1, 32], strides = [1, 1]} : vector<8x32xf32> to vector<1x32xf32>
    %9 = vector.extract_strided_slice %7 {offsets = [1, 0], sizes = [1, 32], strides = [1, 1]} : vector<8x32xf32> to vector<1x32xf32>
    %10 = vector.extract_strided_slice %7 {offsets = [2, 0], sizes = [1, 32], strides = [1, 1]} : vector<8x32xf32> to vector<1x32xf32>
    %11 = vector.extract_strided_slice %7 {offsets = [3, 0], sizes = [1, 32], strides = [1, 1]} : vector<8x32xf32> to vector<1x32xf32>
    %12 = vector.extract_strided_slice %7 {offsets = [4, 0], sizes = [1, 32], strides = [1, 1]} : vector<8x32xf32> to vector<1x32xf32>
    %13 = vector.extract_strided_slice %7 {offsets = [5, 0], sizes = [1, 32], strides = [1, 1]} : vector<8x32xf32> to vector<1x32xf32>
    %14 = vector.extract_strided_slice %7 {offsets = [6, 0], sizes = [1, 8], strides = [1, 1]} : vector<8x32xf32> to vector<1x8xf32>
    %15 = vector.extract_strided_slice %7 {offsets = [7, 0], sizes = [1, 8], strides = [1, 1]} : vector<8x32xf32> to vector<1x8xf32>
    %16 = vector.broadcast %14 : vector<1x8xf32> to vector<8x8xf32>
    %17 = arith.subf %0, %16 : vector<8x8xf32>
    %18 = vector.broadcast %15 : vector<1x8xf32> to vector<8x8xf32>
    %19 = arith.mulf %17, %18 : vector<8x8xf32>
    %cst = arith.constant dense<0.000000e+00> : vector<8x32xf32>
    %20 = tpu.matmul %19, %1, %cst {dimension_numbers = #tpu.dot_dimension_numbers<[1], [0], [0], [1], [0, 0, 1, 1], [], []>} : vector<8x8xf32>, vector<8x32xf32>, vector<8x32xf32> -> vector<8x32xf32>
    %21 = vector.broadcast %8 : vector<1x32xf32> to vector<8x32xf32>
    %22 = arith.addf %20, %21 : vector<8x32xf32>
    %cst_10 = arith.constant 0.000000e+00 : f32
    %23 = vector.broadcast %cst_10 : f32 to vector<8x32xf32>
    %24 = arith.maximumf %22, %23 : vector<8x32xf32>
    %cst_11 = arith.constant dense<0.000000e+00> : vector<8x32xf32>
    %25 = tpu.matmul %24, %2, %cst_11 {dimension_numbers = #tpu.dot_dimension_numbers<[1], [0], [0], [1], [0, 0, 1, 1], [], []>} : vector<8x32xf32>, vector<32x32xf32>, vector<8x32xf32> -> vector<8x32xf32>
    %26 = vector.broadcast %9 : vector<1x32xf32> to vector<8x32xf32>
    %27 = arith.addf %25, %26 : vector<8x32xf32>
    %cst_12 = arith.constant 0.000000e+00 : f32
    %28 = vector.broadcast %cst_12 : f32 to vector<8x32xf32>
    %29 = arith.maximumf %27, %28 : vector<8x32xf32>
    %cst_13 = arith.constant dense<0.000000e+00> : vector<8x32xf32>
    %30 = tpu.matmul %29, %3, %cst_13 {dimension_numbers = #tpu.dot_dimension_numbers<[1], [0], [0], [1], [0, 0, 1, 1], [], []>} : vector<8x32xf32>, vector<32x32xf32>, vector<8x32xf32> -> vector<8x32xf32>
    %31 = vector.broadcast %10 : vector<1x32xf32> to vector<8x32xf32>
    %32 = arith.addf %30, %31 : vector<8x32xf32>
    %33 = arith.addf %22, %32 : vector<8x32xf32>
    %cst_14 = arith.constant 0.000000e+00 : f32
    %34 = vector.broadcast %cst_14 : f32 to vector<8x32xf32>
    %35 = arith.maximumf %33, %34 : vector<8x32xf32>
    %cst_15 = arith.constant dense<0.000000e+00> : vector<8x32xf32>
    %36 = tpu.matmul %35, %4, %cst_15 {dimension_numbers = #tpu.dot_dimension_numbers<[1], [0], [0], [1], [0, 0, 1, 1], [], []>} : vector<8x32xf32>, vector<32x32xf32>, vector<8x32xf32> -> vector<8x32xf32>
    %37 = vector.broadcast %11 : vector<1x32xf32> to vector<8x32xf32>
    %38 = arith.addf %36, %37 : vector<8x32xf32>
    %cst_16 = arith.constant 0.000000e+00 : f32
    %39 = vector.broadcast %cst_16 : f32 to vector<8x32xf32>
    %40 = arith.maximumf %38, %39 : vector<8x32xf32>
    %cst_17 = arith.constant dense<0.000000e+00> : vector<8x32xf32>
    %41 = tpu.matmul %40, %5, %cst_17 {dimension_numbers = #tpu.dot_dimension_numbers<[1], [0], [0], [1], [0, 0, 1, 1], [], []>} : vector<8x32xf32>, vector<32x32xf32>, vector<8x32xf32> -> vector<8x32xf32>
    %42 = vector.broadcast %12 : vector<1x32xf32> to vector<8x32xf32>
    %43 = arith.addf %41, %42 : vector<8x32xf32>
    %44 = arith.addf %33, %43 : vector<8x32xf32>
    %cst_18 = arith.constant dense<0.000000e+00> : vector<8x32xf32>
    %45 = tpu.matmul %44, %6, %cst_18 {dimension_numbers = #tpu.dot_dimension_numbers<[1], [0], [0], [1], [0, 0, 1, 1], [], []>} : vector<8x32xf32>, vector<32x32xf32>, vector<8x32xf32> -> vector<8x32xf32>
    %46 = vector.broadcast %13 : vector<1x32xf32> to vector<8x32xf32>
    %47 = arith.addf %45, %46 : vector<8x32xf32>
    %48 = vector.extract_strided_slice %47 {offsets = [0, 0], sizes = [8, 8], strides = [1, 1]} : vector<8x32xf32> to vector<8x8xf32>
    %49 = vector.extract_strided_slice %47 {offsets = [0, 8], sizes = [8, 8], strides = [1, 1]} : vector<8x32xf32> to vector<8x8xf32>
    %cst_19 = arith.constant 2.000000e+00 : f32
    %50 = vector.broadcast %cst_19 : f32 to vector<8x8xf32>
    %51 = arith.addf %48, %50 : vector<8x8xf32>
    %cst_20 = arith.constant 0.000000e+00 : f32
    %52 = vector.broadcast %cst_20 : f32 to vector<8x8xf32>
    %53 = arith.subf %52, %51 : vector<8x8xf32>
    %54 = math.exp %53 : vector<8x8xf32>
    %cst_21 = arith.constant 1.000000e+00 : f32
    %55 = vector.broadcast %cst_21 : f32 to vector<8x8xf32>
    %56 = arith.addf %55, %54 : vector<8x8xf32>
    %cst_22 = arith.constant 1.000000e+00 : f32
    %57 = vector.broadcast %cst_22 : f32 to vector<8x8xf32>
    %58 = arith.divf %57, %56 : vector<8x8xf32>
    %cst_23 = arith.constant 1.000000e-03 : f32
    %59 = vector.broadcast %cst_23 : f32 to vector<8x8xf32>
    %60 = arith.addf %58, %59 : vector<8x8xf32>
    %61 = arith.subf %0, %49 : vector<8x8xf32>
    %62 = tpu.reciprocal %60 : vector<8x8xf32> -> vector<8x8xf32>
    %63 = arith.mulf %61, %62 : vector<8x8xf32>
    %cst_24 = arith.constant dense<0.000000e+00> : vector<8x32xf32>
    %64 = tpu.matmul %63, %1, %cst_24 {dimension_numbers = #tpu.dot_dimension_numbers<[1], [0], [0], [1], [0, 0, 1, 1], [], []>} : vector<8x8xf32>, vector<8x32xf32>, vector<8x32xf32> -> vector<8x32xf32>
    %65 = vector.broadcast %8 : vector<1x32xf32> to vector<8x32xf32>
    %66 = arith.addf %64, %65 : vector<8x32xf32>
    %cst_25 = arith.constant 0.000000e+00 : f32
    %67 = vector.broadcast %cst_25 : f32 to vector<8x32xf32>
    %68 = arith.maximumf %66, %67 : vector<8x32xf32>
    %cst_26 = arith.constant dense<0.000000e+00> : vector<8x32xf32>
    %69 = tpu.matmul %68, %2, %cst_26 {dimension_numbers = #tpu.dot_dimension_numbers<[1], [0], [0], [1], [0, 0, 1, 1], [], []>} : vector<8x32xf32>, vector<32x32xf32>, vector<8x32xf32> -> vector<8x32xf32>
    %70 = vector.broadcast %9 : vector<1x32xf32> to vector<8x32xf32>
    %71 = arith.addf %69, %70 : vector<8x32xf32>
    %cst_27 = arith.constant 0.000000e+00 : f32
    %72 = vector.broadcast %cst_27 : f32 to vector<8x32xf32>
    %73 = arith.maximumf %71, %72 : vector<8x32xf32>
    %cst_28 = arith.constant dense<0.000000e+00> : vector<8x32xf32>
    %74 = tpu.matmul %73, %3, %cst_28 {dimension_numbers = #tpu.dot_dimension_numbers<[1], [0], [0], [1], [0, 0, 1, 1], [], []>} : vector<8x32xf32>, vector<32x32xf32>, vector<8x32xf32> -> vector<8x32xf32>
    %75 = vector.broadcast %10 : vector<1x32xf32> to vector<8x32xf32>
    %76 = arith.addf %74, %75 : vector<8x32xf32>
    %77 = arith.addf %66, %76 : vector<8x32xf32>
    %cst_29 = arith.constant 0.000000e+00 : f32
    %78 = vector.broadcast %cst_29 : f32 to vector<8x32xf32>
    %79 = arith.maximumf %77, %78 : vector<8x32xf32>
    %cst_30 = arith.constant dense<0.000000e+00> : vector<8x32xf32>
    %80 = tpu.matmul %79, %4, %cst_30 {dimension_numbers = #tpu.dot_dimension_numbers<[1], [0], [0], [1], [0, 0, 1, 1], [], []>} : vector<8x32xf32>, vector<32x32xf32>, vector<8x32xf32> -> vector<8x32xf32>
    %81 = vector.broadcast %11 : vector<1x32xf32> to vector<8x32xf32>
    %82 = arith.addf %80, %81 : vector<8x32xf32>
    %cst_31 = arith.constant 0.000000e+00 : f32
    %83 = vector.broadcast %cst_31 : f32 to vector<8x32xf32>
    %84 = arith.maximumf %82, %83 : vector<8x32xf32>
    %cst_32 = arith.constant dense<0.000000e+00> : vector<8x32xf32>
    %85 = tpu.matmul %84, %5, %cst_32 {dimension_numbers = #tpu.dot_dimension_numbers<[1], [0], [0], [1], [0, 0, 1, 1], [], []>} : vector<8x32xf32>, vector<32x32xf32>, vector<8x32xf32> -> vector<8x32xf32>
    %86 = vector.broadcast %12 : vector<1x32xf32> to vector<8x32xf32>
    %87 = arith.addf %85, %86 : vector<8x32xf32>
    %88 = arith.addf %77, %87 : vector<8x32xf32>
    %cst_33 = arith.constant dense<0.000000e+00> : vector<8x32xf32>
    %89 = tpu.matmul %88, %6, %cst_33 {dimension_numbers = #tpu.dot_dimension_numbers<[1], [0], [0], [1], [0, 0, 1, 1], [], []>} : vector<8x32xf32>, vector<32x32xf32>, vector<8x32xf32> -> vector<8x32xf32>
    %90 = vector.broadcast %13 : vector<1x32xf32> to vector<8x32xf32>
    %91 = arith.addf %89, %90 : vector<8x32xf32>
    %92 = vector.extract_strided_slice %91 {offsets = [0, 0], sizes = [8, 8], strides = [1, 1]} : vector<8x32xf32> to vector<8x8xf32>
    %93 = vector.extract_strided_slice %91 {offsets = [0, 8], sizes = [8, 8], strides = [1, 1]} : vector<8x32xf32> to vector<8x8xf32>
    %cst_34 = arith.constant 2.000000e+00 : f32
    %94 = vector.broadcast %cst_34 : f32 to vector<8x8xf32>
    %95 = arith.addf %92, %94 : vector<8x8xf32>
    %cst_35 = arith.constant 0.000000e+00 : f32
    %96 = vector.broadcast %cst_35 : f32 to vector<8x8xf32>
    %97 = arith.subf %96, %95 : vector<8x8xf32>
    %98 = math.exp %97 : vector<8x8xf32>
    %cst_36 = arith.constant 1.000000e+00 : f32
    %99 = vector.broadcast %cst_36 : f32 to vector<8x8xf32>
    %100 = arith.addf %99, %98 : vector<8x8xf32>
    %cst_37 = arith.constant 1.000000e+00 : f32
    %101 = vector.broadcast %cst_37 : f32 to vector<8x8xf32>
    %102 = arith.divf %101, %100 : vector<8x8xf32>
    %cst_38 = arith.constant 1.000000e-03 : f32
    %103 = vector.broadcast %cst_38 : f32 to vector<8x8xf32>
    %104 = arith.addf %102, %103 : vector<8x8xf32>
    %105 = arith.subf %0, %93 : vector<8x8xf32>
    %106 = tpu.reciprocal %104 : vector<8x8xf32> -> vector<8x8xf32>
    %107 = arith.mulf %105, %106 : vector<8x8xf32>
    %cst_39 = arith.constant dense<0.000000e+00> : vector<8x32xf32>
    %108 = tpu.matmul %107, %1, %cst_39 {dimension_numbers = #tpu.dot_dimension_numbers<[1], [0], [0], [1], [0, 0, 1, 1], [], []>} : vector<8x8xf32>, vector<8x32xf32>, vector<8x32xf32> -> vector<8x32xf32>
    %109 = vector.broadcast %8 : vector<1x32xf32> to vector<8x32xf32>
    %110 = arith.addf %108, %109 : vector<8x32xf32>
    %cst_40 = arith.constant 0.000000e+00 : f32
    %111 = vector.broadcast %cst_40 : f32 to vector<8x32xf32>
    %112 = arith.maximumf %110, %111 : vector<8x32xf32>
    %cst_41 = arith.constant dense<0.000000e+00> : vector<8x32xf32>
    %113 = tpu.matmul %112, %2, %cst_41 {dimension_numbers = #tpu.dot_dimension_numbers<[1], [0], [0], [1], [0, 0, 1, 1], [], []>} : vector<8x32xf32>, vector<32x32xf32>, vector<8x32xf32> -> vector<8x32xf32>
    %114 = vector.broadcast %9 : vector<1x32xf32> to vector<8x32xf32>
    %115 = arith.addf %113, %114 : vector<8x32xf32>
    %cst_42 = arith.constant 0.000000e+00 : f32
    %116 = vector.broadcast %cst_42 : f32 to vector<8x32xf32>
    %117 = arith.maximumf %115, %116 : vector<8x32xf32>
    %cst_43 = arith.constant dense<0.000000e+00> : vector<8x32xf32>
    %118 = tpu.matmul %117, %3, %cst_43 {dimension_numbers = #tpu.dot_dimension_numbers<[1], [0], [0], [1], [0, 0, 1, 1], [], []>} : vector<8x32xf32>, vector<32x32xf32>, vector<8x32xf32> -> vector<8x32xf32>
    %119 = vector.broadcast %10 : vector<1x32xf32> to vector<8x32xf32>
    %120 = arith.addf %118, %119 : vector<8x32xf32>
    %121 = arith.addf %110, %120 : vector<8x32xf32>
    %cst_44 = arith.constant 0.000000e+00 : f32
    %122 = vector.broadcast %cst_44 : f32 to vector<8x32xf32>
    %123 = arith.maximumf %121, %122 : vector<8x32xf32>
    %cst_45 = arith.constant dense<0.000000e+00> : vector<8x32xf32>
    %124 = tpu.matmul %123, %4, %cst_45 {dimension_numbers = #tpu.dot_dimension_numbers<[1], [0], [0], [1], [0, 0, 1, 1], [], []>} : vector<8x32xf32>, vector<32x32xf32>, vector<8x32xf32> -> vector<8x32xf32>
    %125 = vector.broadcast %11 : vector<1x32xf32> to vector<8x32xf32>
    %126 = arith.addf %124, %125 : vector<8x32xf32>
    %cst_46 = arith.constant 0.000000e+00 : f32
    %127 = vector.broadcast %cst_46 : f32 to vector<8x32xf32>
    %128 = arith.maximumf %126, %127 : vector<8x32xf32>
    %cst_47 = arith.constant dense<0.000000e+00> : vector<8x32xf32>
    %129 = tpu.matmul %128, %5, %cst_47 {dimension_numbers = #tpu.dot_dimension_numbers<[1], [0], [0], [1], [0, 0, 1, 1], [], []>} : vector<8x32xf32>, vector<32x32xf32>, vector<8x32xf32> -> vector<8x32xf32>
    %130 = vector.broadcast %12 : vector<1x32xf32> to vector<8x32xf32>
    %131 = arith.addf %129, %130 : vector<8x32xf32>
    %132 = arith.addf %121, %131 : vector<8x32xf32>
    %cst_48 = arith.constant dense<0.000000e+00> : vector<8x32xf32>
    %133 = tpu.matmul %132, %6, %cst_48 {dimension_numbers = #tpu.dot_dimension_numbers<[1], [0], [0], [1], [0, 0, 1, 1], [], []>} : vector<8x32xf32>, vector<32x32xf32>, vector<8x32xf32> -> vector<8x32xf32>
    %134 = vector.broadcast %13 : vector<1x32xf32> to vector<8x32xf32>
    %135 = arith.addf %133, %134 : vector<8x32xf32>
    %136 = vector.extract_strided_slice %135 {offsets = [0, 0], sizes = [8, 8], strides = [1, 1]} : vector<8x32xf32> to vector<8x8xf32>
    %137 = vector.extract_strided_slice %135 {offsets = [0, 8], sizes = [8, 8], strides = [1, 1]} : vector<8x32xf32> to vector<8x8xf32>
    %cst_49 = arith.constant 2.000000e+00 : f32
    %138 = vector.broadcast %cst_49 : f32 to vector<8x8xf32>
    %139 = arith.addf %136, %138 : vector<8x8xf32>
    %cst_50 = arith.constant 0.000000e+00 : f32
    %140 = vector.broadcast %cst_50 : f32 to vector<8x8xf32>
    %141 = arith.subf %140, %139 : vector<8x8xf32>
    %142 = math.exp %141 : vector<8x8xf32>
    %cst_51 = arith.constant 1.000000e+00 : f32
    %143 = vector.broadcast %cst_51 : f32 to vector<8x8xf32>
    %144 = arith.addf %143, %142 : vector<8x8xf32>
    %cst_52 = arith.constant 1.000000e+00 : f32
    %145 = vector.broadcast %cst_52 : f32 to vector<8x8xf32>
    %146 = arith.divf %145, %144 : vector<8x8xf32>
    %cst_53 = arith.constant 1.000000e-03 : f32
    %147 = vector.broadcast %cst_53 : f32 to vector<8x8xf32>
    %148 = arith.addf %146, %147 : vector<8x8xf32>
    %149 = arith.subf %0, %137 : vector<8x8xf32>
    %150 = tpu.reciprocal %148 : vector<8x8xf32> -> vector<8x8xf32>
    %151 = arith.mulf %149, %150 : vector<8x8xf32>
    %cst_54 = arith.constant dense<0.000000e+00> : vector<8x32xf32>
    %152 = tpu.matmul %151, %1, %cst_54 {dimension_numbers = #tpu.dot_dimension_numbers<[1], [0], [0], [1], [0, 0, 1, 1], [], []>} : vector<8x8xf32>, vector<8x32xf32>, vector<8x32xf32> -> vector<8x32xf32>
    %153 = vector.broadcast %8 : vector<1x32xf32> to vector<8x32xf32>
    %154 = arith.addf %152, %153 : vector<8x32xf32>
    %cst_55 = arith.constant 0.000000e+00 : f32
    %155 = vector.broadcast %cst_55 : f32 to vector<8x32xf32>
    %156 = arith.maximumf %154, %155 : vector<8x32xf32>
    %cst_56 = arith.constant dense<0.000000e+00> : vector<8x32xf32>
    %157 = tpu.matmul %156, %2, %cst_56 {dimension_numbers = #tpu.dot_dimension_numbers<[1], [0], [0], [1], [0, 0, 1, 1], [], []>} : vector<8x32xf32>, vector<32x32xf32>, vector<8x32xf32> -> vector<8x32xf32>
    %158 = vector.broadcast %9 : vector<1x32xf32> to vector<8x32xf32>
    %159 = arith.addf %157, %158 : vector<8x32xf32>
    %cst_57 = arith.constant 0.000000e+00 : f32
    %160 = vector.broadcast %cst_57 : f32 to vector<8x32xf32>
    %161 = arith.maximumf %159, %160 : vector<8x32xf32>
    %cst_58 = arith.constant dense<0.000000e+00> : vector<8x32xf32>
    %162 = tpu.matmul %161, %3, %cst_58 {dimension_numbers = #tpu.dot_dimension_numbers<[1], [0], [0], [1], [0, 0, 1, 1], [], []>} : vector<8x32xf32>, vector<32x32xf32>, vector<8x32xf32> -> vector<8x32xf32>
    %163 = vector.broadcast %10 : vector<1x32xf32> to vector<8x32xf32>
    %164 = arith.addf %162, %163 : vector<8x32xf32>
    %165 = arith.addf %154, %164 : vector<8x32xf32>
    %cst_59 = arith.constant 0.000000e+00 : f32
    %166 = vector.broadcast %cst_59 : f32 to vector<8x32xf32>
    %167 = arith.maximumf %165, %166 : vector<8x32xf32>
    %cst_60 = arith.constant dense<0.000000e+00> : vector<8x32xf32>
    %168 = tpu.matmul %167, %4, %cst_60 {dimension_numbers = #tpu.dot_dimension_numbers<[1], [0], [0], [1], [0, 0, 1, 1], [], []>} : vector<8x32xf32>, vector<32x32xf32>, vector<8x32xf32> -> vector<8x32xf32>
    %169 = vector.broadcast %11 : vector<1x32xf32> to vector<8x32xf32>
    %170 = arith.addf %168, %169 : vector<8x32xf32>
    %cst_61 = arith.constant 0.000000e+00 : f32
    %171 = vector.broadcast %cst_61 : f32 to vector<8x32xf32>
    %172 = arith.maximumf %170, %171 : vector<8x32xf32>
    %cst_62 = arith.constant dense<0.000000e+00> : vector<8x32xf32>
    %173 = tpu.matmul %172, %5, %cst_62 {dimension_numbers = #tpu.dot_dimension_numbers<[1], [0], [0], [1], [0, 0, 1, 1], [], []>} : vector<8x32xf32>, vector<32x32xf32>, vector<8x32xf32> -> vector<8x32xf32>
    %174 = vector.broadcast %12 : vector<1x32xf32> to vector<8x32xf32>
    %175 = arith.addf %173, %174 : vector<8x32xf32>
    %176 = arith.addf %165, %175 : vector<8x32xf32>
    %cst_63 = arith.constant dense<0.000000e+00> : vector<8x32xf32>
    %177 = tpu.matmul %176, %6, %cst_63 {dimension_numbers = #tpu.dot_dimension_numbers<[1], [0], [0], [1], [0, 0, 1, 1], [], []>} : vector<8x32xf32>, vector<32x32xf32>, vector<8x32xf32> -> vector<8x32xf32>
    %178 = vector.broadcast %13 : vector<1x32xf32> to vector<8x32xf32>
    %179 = arith.addf %177, %178 : vector<8x32xf32>
    %180 = vector.extract_strided_slice %179 {offsets = [0, 0], sizes = [8, 8], strides = [1, 1]} : vector<8x32xf32> to vector<8x8xf32>
    %181 = vector.extract_strided_slice %179 {offsets = [0, 8], sizes = [8, 8], strides = [1, 1]} : vector<8x32xf32> to vector<8x8xf32>
    %cst_64 = arith.constant 2.000000e+00 : f32
    %182 = vector.broadcast %cst_64 : f32 to vector<8x8xf32>
    %183 = arith.addf %180, %182 : vector<8x8xf32>
    %cst_65 = arith.constant 0.000000e+00 : f32
    %184 = vector.broadcast %cst_65 : f32 to vector<8x8xf32>
    %185 = arith.subf %184, %183 : vector<8x8xf32>
    %186 = math.exp %185 : vector<8x8xf32>
    %cst_66 = arith.constant 1.000000e+00 : f32
    %187 = vector.broadcast %cst_66 : f32 to vector<8x8xf32>
    %188 = arith.addf %187, %186 : vector<8x8xf32>
    %cst_67 = arith.constant 1.000000e+00 : f32
    %189 = vector.broadcast %cst_67 : f32 to vector<8x8xf32>
    %190 = arith.divf %189, %188 : vector<8x8xf32>
    %cst_68 = arith.constant 1.000000e-03 : f32
    %191 = vector.broadcast %cst_68 : f32 to vector<8x8xf32>
    %192 = arith.addf %190, %191 : vector<8x8xf32>
    %193 = arith.subf %0, %181 : vector<8x8xf32>
    %194 = tpu.reciprocal %192 : vector<8x8xf32> -> vector<8x8xf32>
    %195 = arith.mulf %193, %194 : vector<8x8xf32>
    %cst_69 = arith.constant dense<0.000000e+00> : vector<8x32xf32>
    %196 = tpu.matmul %195, %1, %cst_69 {dimension_numbers = #tpu.dot_dimension_numbers<[1], [0], [0], [1], [0, 0, 1, 1], [], []>} : vector<8x8xf32>, vector<8x32xf32>, vector<8x32xf32> -> vector<8x32xf32>
    %197 = vector.broadcast %8 : vector<1x32xf32> to vector<8x32xf32>
    %198 = arith.addf %196, %197 : vector<8x32xf32>
    %cst_70 = arith.constant 0.000000e+00 : f32
    %199 = vector.broadcast %cst_70 : f32 to vector<8x32xf32>
    %200 = arith.maximumf %198, %199 : vector<8x32xf32>
    %cst_71 = arith.constant dense<0.000000e+00> : vector<8x32xf32>
    %201 = tpu.matmul %200, %2, %cst_71 {dimension_numbers = #tpu.dot_dimension_numbers<[1], [0], [0], [1], [0, 0, 1, 1], [], []>} : vector<8x32xf32>, vector<32x32xf32>, vector<8x32xf32> -> vector<8x32xf32>
    %202 = vector.broadcast %9 : vector<1x32xf32> to vector<8x32xf32>
    %203 = arith.addf %201, %202 : vector<8x32xf32>
    %cst_72 = arith.constant 0.000000e+00 : f32
    %204 = vector.broadcast %cst_72 : f32 to vector<8x32xf32>
    %205 = arith.maximumf %203, %204 : vector<8x32xf32>
    %cst_73 = arith.constant dense<0.000000e+00> : vector<8x32xf32>
    %206 = tpu.matmul %205, %3, %cst_73 {dimension_numbers = #tpu.dot_dimension_numbers<[1], [0], [0], [1], [0, 0, 1, 1], [], []>} : vector<8x32xf32>, vector<32x32xf32>, vector<8x32xf32> -> vector<8x32xf32>
    %207 = vector.broadcast %10 : vector<1x32xf32> to vector<8x32xf32>
    %208 = arith.addf %206, %207 : vector<8x32xf32>
    %209 = arith.addf %198, %208 : vector<8x32xf32>
    %cst_74 = arith.constant 0.000000e+00 : f32
    %210 = vector.broadcast %cst_74 : f32 to vector<8x32xf32>
    %211 = arith.maximumf %209, %210 : vector<8x32xf32>
    %cst_75 = arith.constant dense<0.000000e+00> : vector<8x32xf32>
    %212 = tpu.matmul %211, %4, %cst_75 {dimension_numbers = #tpu.dot_dimension_numbers<[1], [0], [0], [1], [0, 0, 1, 1], [], []>} : vector<8x32xf32>, vector<32x32xf32>, vector<8x32xf32> -> vector<8x32xf32>
    %213 = vector.broadcast %11 : vector<1x32xf32> to vector<8x32xf32>
    %214 = arith.addf %212, %213 : vector<8x32xf32>
    %cst_76 = arith.constant 0.000000e+00 : f32
    %215 = vector.broadcast %cst_76 : f32 to vector<8x32xf32>
    %216 = arith.maximumf %214, %215 : vector<8x32xf32>
    %cst_77 = arith.constant dense<0.000000e+00> : vector<8x32xf32>
    %217 = tpu.matmul %216, %5, %cst_77 {dimension_numbers = #tpu.dot_dimension_numbers<[1], [0], [0], [1], [0, 0, 1, 1], [], []>} : vector<8x32xf32>, vector<32x32xf32>, vector<8x32xf32> -> vector<8x32xf32>
    %218 = vector.broadcast %12 : vector<1x32xf32> to vector<8x32xf32>
    %219 = arith.addf %217, %218 : vector<8x32xf32>
    %220 = arith.addf %209, %219 : vector<8x32xf32>
    %cst_78 = arith.constant dense<0.000000e+00> : vector<8x32xf32>
    %221 = tpu.matmul %220, %6, %cst_78 {dimension_numbers = #tpu.dot_dimension_numbers<[1], [0], [0], [1], [0, 0, 1, 1], [], []>} : vector<8x32xf32>, vector<32x32xf32>, vector<8x32xf32> -> vector<8x32xf32>
    %222 = vector.broadcast %13 : vector<1x32xf32> to vector<8x32xf32>
    %223 = arith.addf %221, %222 : vector<8x32xf32>
    %224 = vector.extract_strided_slice %223 {offsets = [0, 0], sizes = [8, 8], strides = [1, 1]} : vector<8x32xf32> to vector<8x8xf32>
    %225 = vector.extract_strided_slice %223 {offsets = [0, 8], sizes = [8, 8], strides = [1, 1]} : vector<8x32xf32> to vector<8x8xf32>
    %cst_79 = arith.constant 2.000000e+00 : f32
    %226 = vector.broadcast %cst_79 : f32 to vector<8x8xf32>
    %227 = arith.addf %224, %226 : vector<8x8xf32>
    %cst_80 = arith.constant 0.000000e+00 : f32
    %228 = vector.broadcast %cst_80 : f32 to vector<8x8xf32>
    %229 = arith.subf %228, %227 : vector<8x8xf32>
    %230 = math.exp %229 : vector<8x8xf32>
    %cst_81 = arith.constant 1.000000e+00 : f32
    %231 = vector.broadcast %cst_81 : f32 to vector<8x8xf32>
    %232 = arith.addf %231, %230 : vector<8x8xf32>
    %cst_82 = arith.constant 1.000000e+00 : f32
    %233 = vector.broadcast %cst_82 : f32 to vector<8x8xf32>
    %234 = arith.divf %233, %232 : vector<8x8xf32>
    %cst_83 = arith.constant 1.000000e-03 : f32
    %235 = vector.broadcast %cst_83 : f32 to vector<8x8xf32>
    %236 = arith.addf %234, %235 : vector<8x8xf32>
    %237 = arith.subf %0, %225 : vector<8x8xf32>
    %238 = tpu.reciprocal %236 : vector<8x8xf32> -> vector<8x8xf32>
    %239 = arith.mulf %237, %238 : vector<8x8xf32>
    %cst_84 = arith.constant dense<0.000000e+00> : vector<8x32xf32>
    %240 = tpu.matmul %239, %1, %cst_84 {dimension_numbers = #tpu.dot_dimension_numbers<[1], [0], [0], [1], [0, 0, 1, 1], [], []>} : vector<8x8xf32>, vector<8x32xf32>, vector<8x32xf32> -> vector<8x32xf32>
    %241 = vector.broadcast %8 : vector<1x32xf32> to vector<8x32xf32>
    %242 = arith.addf %240, %241 : vector<8x32xf32>
    %cst_85 = arith.constant 0.000000e+00 : f32
    %243 = vector.broadcast %cst_85 : f32 to vector<8x32xf32>
    %244 = arith.maximumf %242, %243 : vector<8x32xf32>
    %cst_86 = arith.constant dense<0.000000e+00> : vector<8x32xf32>
    %245 = tpu.matmul %244, %2, %cst_86 {dimension_numbers = #tpu.dot_dimension_numbers<[1], [0], [0], [1], [0, 0, 1, 1], [], []>} : vector<8x32xf32>, vector<32x32xf32>, vector<8x32xf32> -> vector<8x32xf32>
    %246 = vector.broadcast %9 : vector<1x32xf32> to vector<8x32xf32>
    %247 = arith.addf %245, %246 : vector<8x32xf32>
    %cst_87 = arith.constant 0.000000e+00 : f32
    %248 = vector.broadcast %cst_87 : f32 to vector<8x32xf32>
    %249 = arith.maximumf %247, %248 : vector<8x32xf32>
    %cst_88 = arith.constant dense<0.000000e+00> : vector<8x32xf32>
    %250 = tpu.matmul %249, %3, %cst_88 {dimension_numbers = #tpu.dot_dimension_numbers<[1], [0], [0], [1], [0, 0, 1, 1], [], []>} : vector<8x32xf32>, vector<32x32xf32>, vector<8x32xf32> -> vector<8x32xf32>
    %251 = vector.broadcast %10 : vector<1x32xf32> to vector<8x32xf32>
    %252 = arith.addf %250, %251 : vector<8x32xf32>
    %253 = arith.addf %242, %252 : vector<8x32xf32>
    %cst_89 = arith.constant 0.000000e+00 : f32
    %254 = vector.broadcast %cst_89 : f32 to vector<8x32xf32>
    %255 = arith.maximumf %253, %254 : vector<8x32xf32>
    %cst_90 = arith.constant dense<0.000000e+00> : vector<8x32xf32>
    %256 = tpu.matmul %255, %4, %cst_90 {dimension_numbers = #tpu.dot_dimension_numbers<[1], [0], [0], [1], [0, 0, 1, 1], [], []>} : vector<8x32xf32>, vector<32x32xf32>, vector<8x32xf32> -> vector<8x32xf32>
    %257 = vector.broadcast %11 : vector<1x32xf32> to vector<8x32xf32>
    %258 = arith.addf %256, %257 : vector<8x32xf32>
    %cst_91 = arith.constant 0.000000e+00 : f32
    %259 = vector.broadcast %cst_91 : f32 to vector<8x32xf32>
    %260 = arith.maximumf %258, %259 : vector<8x32xf32>
    %cst_92 = arith.constant dense<0.000000e+00> : vector<8x32xf32>
    %261 = tpu.matmul %260, %5, %cst_92 {dimension_numbers = #tpu.dot_dimension_numbers<[1], [0], [0], [1], [0, 0, 1, 1], [], []>} : vector<8x32xf32>, vector<32x32xf32>, vector<8x32xf32> -> vector<8x32xf32>
    %262 = vector.broadcast %12 : vector<1x32xf32> to vector<8x32xf32>
    %263 = arith.addf %261, %262 : vector<8x32xf32>
    %264 = arith.addf %253, %263 : vector<8x32xf32>
    %cst_93 = arith.constant dense<0.000000e+00> : vector<8x32xf32>
    %265 = tpu.matmul %264, %6, %cst_93 {dimension_numbers = #tpu.dot_dimension_numbers<[1], [0], [0], [1], [0, 0, 1, 1], [], []>} : vector<8x32xf32>, vector<32x32xf32>, vector<8x32xf32> -> vector<8x32xf32>
    %266 = vector.broadcast %13 : vector<1x32xf32> to vector<8x32xf32>
    %267 = arith.addf %265, %266 : vector<8x32xf32>
    %268 = vector.extract_strided_slice %267 {offsets = [0, 0], sizes = [8, 8], strides = [1, 1]} : vector<8x32xf32> to vector<8x8xf32>
    %269 = vector.extract_strided_slice %267 {offsets = [0, 8], sizes = [8, 8], strides = [1, 1]} : vector<8x32xf32> to vector<8x8xf32>
    %cst_94 = arith.constant 2.000000e+00 : f32
    %270 = vector.broadcast %cst_94 : f32 to vector<8x8xf32>
    %271 = arith.addf %268, %270 : vector<8x8xf32>
    %cst_95 = arith.constant 0.000000e+00 : f32
    %272 = vector.broadcast %cst_95 : f32 to vector<8x8xf32>
    %273 = arith.subf %272, %271 : vector<8x8xf32>
    %274 = math.exp %273 : vector<8x8xf32>
    %cst_96 = arith.constant 1.000000e+00 : f32
    %275 = vector.broadcast %cst_96 : f32 to vector<8x8xf32>
    %276 = arith.addf %275, %274 : vector<8x8xf32>
    %cst_97 = arith.constant 1.000000e+00 : f32
    %277 = vector.broadcast %cst_97 : f32 to vector<8x8xf32>
    %278 = arith.divf %277, %276 : vector<8x8xf32>
    %cst_98 = arith.constant 1.000000e-03 : f32
    %279 = vector.broadcast %cst_98 : f32 to vector<8x8xf32>
    %280 = arith.addf %278, %279 : vector<8x8xf32>
    %281 = arith.subf %0, %269 : vector<8x8xf32>
    %282 = tpu.reciprocal %280 : vector<8x8xf32> -> vector<8x8xf32>
    %283 = arith.mulf %281, %282 : vector<8x8xf32>
    %cst_99 = arith.constant dense<0.000000e+00> : vector<8x32xf32>
    %284 = tpu.matmul %283, %1, %cst_99 {dimension_numbers = #tpu.dot_dimension_numbers<[1], [0], [0], [1], [0, 0, 1, 1], [], []>} : vector<8x8xf32>, vector<8x32xf32>, vector<8x32xf32> -> vector<8x32xf32>
    %285 = vector.broadcast %8 : vector<1x32xf32> to vector<8x32xf32>
    %286 = arith.addf %284, %285 : vector<8x32xf32>
    %cst_100 = arith.constant 0.000000e+00 : f32
    %287 = vector.broadcast %cst_100 : f32 to vector<8x32xf32>
    %288 = arith.maximumf %286, %287 : vector<8x32xf32>
    %cst_101 = arith.constant dense<0.000000e+00> : vector<8x32xf32>
    %289 = tpu.matmul %288, %2, %cst_101 {dimension_numbers = #tpu.dot_dimension_numbers<[1], [0], [0], [1], [0, 0, 1, 1], [], []>} : vector<8x32xf32>, vector<32x32xf32>, vector<8x32xf32> -> vector<8x32xf32>
    %290 = vector.broadcast %9 : vector<1x32xf32> to vector<8x32xf32>
    %291 = arith.addf %289, %290 : vector<8x32xf32>
    %cst_102 = arith.constant 0.000000e+00 : f32
    %292 = vector.broadcast %cst_102 : f32 to vector<8x32xf32>
    %293 = arith.maximumf %291, %292 : vector<8x32xf32>
    %cst_103 = arith.constant dense<0.000000e+00> : vector<8x32xf32>
    %294 = tpu.matmul %293, %3, %cst_103 {dimension_numbers = #tpu.dot_dimension_numbers<[1], [0], [0], [1], [0, 0, 1, 1], [], []>} : vector<8x32xf32>, vector<32x32xf32>, vector<8x32xf32> -> vector<8x32xf32>
    %295 = vector.broadcast %10 : vector<1x32xf32> to vector<8x32xf32>
    %296 = arith.addf %294, %295 : vector<8x32xf32>
    %297 = arith.addf %286, %296 : vector<8x32xf32>
    %cst_104 = arith.constant 0.000000e+00 : f32
    %298 = vector.broadcast %cst_104 : f32 to vector<8x32xf32>
    %299 = arith.maximumf %297, %298 : vector<8x32xf32>
    %cst_105 = arith.constant dense<0.000000e+00> : vector<8x32xf32>
    %300 = tpu.matmul %299, %4, %cst_105 {dimension_numbers = #tpu.dot_dimension_numbers<[1], [0], [0], [1], [0, 0, 1, 1], [], []>} : vector<8x32xf32>, vector<32x32xf32>, vector<8x32xf32> -> vector<8x32xf32>
    %301 = vector.broadcast %11 : vector<1x32xf32> to vector<8x32xf32>
    %302 = arith.addf %300, %301 : vector<8x32xf32>
    %cst_106 = arith.constant 0.000000e+00 : f32
    %303 = vector.broadcast %cst_106 : f32 to vector<8x32xf32>
    %304 = arith.maximumf %302, %303 : vector<8x32xf32>
    %cst_107 = arith.constant dense<0.000000e+00> : vector<8x32xf32>
    %305 = tpu.matmul %304, %5, %cst_107 {dimension_numbers = #tpu.dot_dimension_numbers<[1], [0], [0], [1], [0, 0, 1, 1], [], []>} : vector<8x32xf32>, vector<32x32xf32>, vector<8x32xf32> -> vector<8x32xf32>
    %306 = vector.broadcast %12 : vector<1x32xf32> to vector<8x32xf32>
    %307 = arith.addf %305, %306 : vector<8x32xf32>
    %308 = arith.addf %297, %307 : vector<8x32xf32>
    %cst_108 = arith.constant dense<0.000000e+00> : vector<8x32xf32>
    %309 = tpu.matmul %308, %6, %cst_108 {dimension_numbers = #tpu.dot_dimension_numbers<[1], [0], [0], [1], [0, 0, 1, 1], [], []>} : vector<8x32xf32>, vector<32x32xf32>, vector<8x32xf32> -> vector<8x32xf32>
    %310 = vector.broadcast %13 : vector<1x32xf32> to vector<8x32xf32>
    %311 = arith.addf %309, %310 : vector<8x32xf32>
    %312 = vector.extract_strided_slice %311 {offsets = [0, 0], sizes = [8, 8], strides = [1, 1]} : vector<8x32xf32> to vector<8x8xf32>
    %313 = vector.extract_strided_slice %311 {offsets = [0, 8], sizes = [8, 8], strides = [1, 1]} : vector<8x32xf32> to vector<8x8xf32>
    %cst_109 = arith.constant 2.000000e+00 : f32
    %314 = vector.broadcast %cst_109 : f32 to vector<8x8xf32>
    %315 = arith.addf %312, %314 : vector<8x8xf32>
    %cst_110 = arith.constant 0.000000e+00 : f32
    %316 = vector.broadcast %cst_110 : f32 to vector<8x8xf32>
    %317 = arith.subf %316, %315 : vector<8x8xf32>
    %318 = math.exp %317 : vector<8x8xf32>
    %cst_111 = arith.constant 1.000000e+00 : f32
    %319 = vector.broadcast %cst_111 : f32 to vector<8x8xf32>
    %320 = arith.addf %319, %318 : vector<8x8xf32>
    %cst_112 = arith.constant 1.000000e+00 : f32
    %321 = vector.broadcast %cst_112 : f32 to vector<8x8xf32>
    %322 = arith.divf %321, %320 : vector<8x8xf32>
    %cst_113 = arith.constant 1.000000e-03 : f32
    %323 = vector.broadcast %cst_113 : f32 to vector<8x8xf32>
    %324 = arith.addf %322, %323 : vector<8x8xf32>
    %325 = arith.subf %0, %313 : vector<8x8xf32>
    %326 = tpu.reciprocal %324 : vector<8x8xf32> -> vector<8x8xf32>
    %327 = arith.mulf %325, %326 : vector<8x8xf32>
    %c0_114 = arith.constant 0 : index
    %c0_115 = arith.constant 0 : index
    %328 = vector.load %arg3[%c0_114, %c0_115] : memref<8x8xf32, #tpu.memory_space<vmem>>, vector<8x8xf32>
    tpu.vector_store %arg3[%c0_114, %c0_115], %327 {strides = array<i32>} : memref<8x8xf32, #tpu.memory_space<vmem>>, vector<8x8xf32>,
    return
  }
}

</mosaic_0001>

<bundles_post_ra>
// kernel: tpu_custom_call.1
= control target key start
LH: loop header
LB: loop body
LE: loop exit
PB: predicated region body
PF: predicated region fallthrough
CT: control target
= control target key end

     0   :  { %v38_v1 = vlaneseq  ;;  %v4043_v2 = vmov 0.0   ;;  %vm4044_vm0 = vmmov 0   ;;  %s4743_s0 = inlined_call_operand.vmem [shape: f32[8,8], index: 0, kind: input, shape index: {}]   ;;  %s4744_s1 = inlined_call_operand.vmem [shape: f32[168,32], index: 1, kind: input, shape index: {}]   ;;  %s4745_s2 = inlined_call_operand.vmem [shape: f32[8,32], index: 2, kind: input, shape index: {}]   ;;  %s4746_s3 = inlined_call_operand.hbm [shape: f32[8,8], index: 3, kind: output, shape index: {}]  }
   0x1   :  { %v4070_v0 = vld [vmem:[%s4744_s1] sm:$0xff]  ;;  %3533 = vmatprep.subr.mxu0 %v4043_v2  ;;  %3535 = vmatprep.mubr.msk.f32.mxu0 %vm4044_vm0, %v4043_v2 }
   0x2   :  { %v4078_v3 = vld [vmem:[%s4744_s1 + $0x20] sm:$0xff] }
   0x3   :  { %8 = vsyncpa [#allocation3], 0  ;;  %3534 = vmatpush3.msra.mxu0 %v4070_v0  ;;  %v4081_v4 = vshrl.u32 %v38_v1, 7  ;;  %3538 = vmatprep.subr.mxu1 %v4043_v2  ;;  %v4087_v5 = vld [vmem:[%s4745_s2] sm:$0xff]  ;;  %vm52_vm1 = vcmask 64512   ;;  %v4110_v13 = vld [vmem:[%s4744_s1 + $0x18] sm:$0xff] }
   0x4   :  { %3539 = vmatpush3.msra.mxu1 %v4078_v3  ;;  %3546 = vmatprep.mubr.msk.f32.mxu1 %vm4044_vm0, %v4043_v2  ;;  %v4099_v8 = vld [vmem:[%s4743_s0] sm:$0xff]  ;;  %v4117_v14 = vld [vmem:[%s4744_s1 + $0x10] sm:$0xff]  ;;  %v4124_v15 = vld [vmem:[%s4744_s1 + $0x8] sm:$0xff]  ;;  %vm131_vm2 = vcmask 261120   ;;  %s4045_s29 = smov 120  }
   0x5   :  { %v40_v6 = vsub.s32 6, %v4081_v4  ;;  %v45_v7 = vsub.s32 7, %v4081_v4  ;;  %3540 = vmatprep.subr.mxu1 %v4043_v2  ;;  %3549 = vmatprep.subr.mxu0 %v4043_v2  ;;  %v4130_v16 = vld [vmem:[%s4744_s1 + $0x40] sm:$0xff]  ;;  %v50_v17 = vsub.s32 0, %v4081_v4  ;;  %v4146_v23 = vld [vmem:[%s4744_s1 + $0x38] sm:$0xff]  ;;  %v4153_v24 = vld [vmem:[%s4744_s1 + $0x30] sm:$0xff] }
   0x6   :  { %3541 = vmatpush3.msra.mxu1 %v4110_v13  ;;  %v4160_v25 = vld [vmem:[%s4744_s1 + $0x28] sm:$0xff]  ;;  %v129_v26 = vsub.s32 1, %v4081_v4  ;;  %v4175_v32 = vld [vmem:[%s4744_s1 + $0x60] sm:$0xff]  ;;  %v4182_v33 = vld [vmem:[%s4744_s1 + $0x58] sm:$0xff]  ;;  %v208_v37 = vsub.s32 2, %v4081_v4  ;;  %v287_v48 = vsub.s32 3, %v4081_v4 }
   0x7   :  { %v41_v9 = vrot.slane %v4087_v5, %v40_v6  ;;  %v46_v10 = vrot.slane %v4087_v5, %v45_v7  ;;  %3542 = vmatprep.subr.mxu1 %v4043_v2  ;;  %v4137_v18 = vrot.slane %v4087_v5, %v50_v17  ;;  %v4189_v34 = vld [vmem:[%s4744_s1 + $0x50] sm:$0xff]  ;;  %v4196_v35 = vld [vmem:[%s4744_s1 + $0x48] sm:$0xff]  ;;  %v4202_v36 = vld [vmem:[%s4744_s1 + $0x80] sm:$0xff]  ;;  %v365_v57 = vsub.s32 4, %v4081_v4 }
   0x8   :  { %3543 = vmatpush3.msra.mxu1 %v4117_v14  ;;  %v4166_v27 = vrot.slane %v4087_v5, %v129_v26  ;;  %v4209_v38 = vrot.slane %v4087_v5, %v208_v37  ;;  %v4218_v44 = vld [vmem:[%s4744_s1 + $0x78] sm:$0xff]  ;;  %v4225_v45 = vld [vmem:[%s4744_s1 + $0x70] sm:$0xff]  ;;  %v4232_v46 = vld [vmem:[%s4744_s1 + $0x68] sm:$0xff]  ;;  %v4245_v49 = vrot.slane %v4087_v5, %v287_v48  ;;  %v443_v63 = vsub.s32 5, %v4081_v4 }
   0x9   :  { %v42_v11 = vsub.f32 %v4099_v8, %v41_v9  ;;  %3544 = vmatprep.subr.mxu1 %v4043_v2  ;;  %v4238_v47 = vld [vmem:[%s4744_s1 + $0xa0] sm:$0xff]  ;;  %v4256_v54 = vld [vmem:[%s4744_s1 + $0x98] sm:$0xff]  ;;  %v4263_v55 = vld [vmem:[%s4744_s1 + $0x90] sm:$0xff]  ;;  %v4276_v58 = vrot.slane %v4087_v5, %v365_v57 }
   0xa   :  { %3545 = vmatpush3.msra.mxu1 %v4124_v15  ;;  %v4270_v56 = vld [vmem:[%s4744_s1 + $0x88] sm:$0xff]  ;;  %v4292_v1 = vrot.slane %v4087_v5, %v443_v63 }
   0xb   :  { %v47_v12 = vmul.f32 %v46_v10, %v42_v11  ;;  %3560 = vmatprep.subr.mxu1 %v4043_v2 }
   0xd   :  { %3536 = vmatmul.mubr.msk.f32.vlgmr.msra.gmra.mxu0 %vm52_vm1, %v47_v12 }
   0xe   :  { %3557 = vmatprep.mubr.msk.f32.mxu0 %vm4044_vm0, %v4043_v2  ;;  %3550 = vmatpush3.msra.mxu0 %v4130_v16 }
   0xf   :  { %3551 = vmatprep.subr.mxu0 %v4043_v2 }
  0x10   :  { %3552 = vmatpush3.msra.mxu0 %v4146_v23 }
  0x11   :  { %3553 = vmatprep.subr.mxu0 %v4043_v2 }
  0x12   :  { %3554 = vmatpush3.msra.mxu0 %v4153_v24 }
  0x13   :  { %3555 = vmatprep.subr.mxu0 %v4043_v2 }
  0x14   :  { %3556 = vmatpush3.msra.mxu0 %v4160_v25 }
  0x15   :  { %3571 = vmatprep.subr.mxu0 %v4043_v2 }
  0xcd   :  { %v122_v19 = vpop.f32.mrf.mxu0 }
  0xce   :  { %v123_v20 = vadd.f32 %v122_v19, %v4137_v18 }
  0xcf   :  { %v3537_v21 = vpop.f32.mrf.mxu0 }
  0xd0   :  { %v126_v22 = vmax.f32 %v123_v20, 0.0 }
  0xd2   :  { %3547 = vmatmul.mubr.msk.f32.vlgmr.msra.gmra.mxu1 %vm131_vm2, %v126_v22 }
  0xd3   :  { %3568 = vmatprep.mubr.msk.f32.mxu1 %vm4044_vm0, %v4043_v2  ;;  %3561 = vmatpush3.msra.mxu1 %v4175_v32 }
  0xd4   :  { %3562 = vmatprep.subr.mxu1 %v4043_v2 }
  0xd5   :  { %3563 = vmatpush3.msra.mxu1 %v4182_v33 }
  0xd6   :  { %3564 = vmatprep.subr.mxu1 %v4043_v2 }
  0xd7   :  { %3565 = vmatpush3.msra.mxu1 %v4189_v34 }
  0xd8   :  { %3566 = vmatprep.subr.mxu1 %v4043_v2 }
  0xd9   :  { %3567 = vmatpush3.msra.mxu1 %v4196_v35 }
  0xda   :  { %3582 = vmatprep.subr.mxu1 %v4043_v2 }
 0x192   :  { %v201_v28 = vpop.f32.mrf.mxu1 }
 0x193   :  { %v202_v29 = vadd.f32 %v201_v28, %v4166_v27 }
 0x194   :  { %v3548_v30 = vpop.f32.mrf.mxu1 }
 0x195   :  { %v205_v31 = vmax.f32 %v202_v29, 0.0 }
 0x197   :  { %3558 = vmatmul.mubr.msk.f32.vlgmr.msra.gmra.mxu0 %vm131_vm2, %v205_v31 }
 0x198   :  { %3579 = vmatprep.mubr.msk.f32.mxu0 %vm4044_vm0, %v4043_v2  ;;  %3572 = vmatpush3.msra.mxu0 %v4202_v36 }
 0x199   :  { %3573 = vmatprep.subr.mxu0 %v4043_v2 }
 0x19a   :  { %3574 = vmatpush3.msra.mxu0 %v4218_v44 }
 0x19b   :  { %3575 = vmatprep.subr.mxu0 %v4043_v2 }
 0x19c   :  { %3576 = vmatpush3.msra.mxu0 %v4225_v45 }
 0x19d   :  { %3577 = vmatprep.subr.mxu0 %v4043_v2 }
 0x19e   :  { %3578 = vmatpush3.msra.mxu0 %v4232_v46 }
 0x19f   :  { %3593 = vmatprep.subr.mxu0 %v4043_v2 }
 0x257   :  { %v279_v39 = vpop.f32.mrf.mxu0 }
 0x258   :  { %v280_v40 = vadd.f32 %v279_v39, %v4209_v38 }
 0x259   :  { %v3559_v41 = vpop.f32.mrf.mxu0 }
 0x25a   :  { %v283_v42 = vadd.f32 %v280_v40, %v123_v20 }
 0x25c   :  { %v284_v43 = vmax.f32 %v283_v42, 0.0 }
 0x25e   :  { %3569 = vmatmul.mubr.msk.f32.vlgmr.msra.gmra.mxu1 %vm131_vm2, %v284_v43 }
 0x25f   :  { %3590 = vmatprep.mubr.msk.f32.mxu1 %vm4044_vm0, %v4043_v2  ;;  %3583 = vmatpush3.msra.mxu1 %v4238_v47 }
 0x260   :  { %3584 = vmatprep.subr.mxu1 %v4043_v2 }
 0x261   :  { %3585 = vmatpush3.msra.mxu1 %v4256_v54 }
 0x262   :  { %3586 = vmatprep.subr.mxu1 %v4043_v2 }
 0x263   :  { %3587 = vmatpush3.msra.mxu1 %v4263_v55 }
 0x264   :  { %3588 = vmatprep.subr.mxu1 %v4043_v2 }
 0x265   :  { %3589 = vmatpush3.msra.mxu1 %v4270_v56 }
 0x266   :  { %3609 = vmatprep.subr.mxu1 %v4043_v2 }
 0x31e   :  { %v358_v50 = vpop.f32.mrf.mxu1 }
 0x31f   :  { %v359_v51 = vadd.f32 %v358_v50, %v4245_v49 }
 0x320   :  { %v3570_v52 = vpop.f32.mrf.mxu1 }
 0x321   :  { %v362_v53 = vmax.f32 %v359_v51, 0.0 }
 0x323   :  { %3580 = vmatmul.mubr.msk.f32.vlgmr.msra.gmra.mxu0 %vm131_vm2, %v362_v53 }
 0x324   :  { %3594 = vmatpush3.msra.mxu0 %v4070_v0  ;;  %3595 = vmatprep.mubr.msk.f32.mxu0 %vm4044_vm0, %v4043_v2 }
 0x325   :  { %3598 = vmatprep.subr.mxu0 %v4043_v2 }
 0x3e3   :  { %v436_v59 = vpop.f32.mrf.mxu0 }
 0x3e4   :  { %v437_v60 = vadd.f32 %v436_v59, %v4276_v58 }
 0x3e5   :  { %v3581_v61 = vpop.f32.mrf.mxu0 }
 0x3e6   :  { %v440_v62 = vadd.f32 %v437_v60, %v283_v42 }
 0x3e8   :  { %3591 = vmatmul.mubr.msk.f32.vlgmr.msra.gmra.mxu1 %vm131_vm2, %v440_v62 }
 0x3e9   :  { %3610 = vmatpush3.msra.mxu1 %v4130_v16  ;;  %3617 = vmatprep.mubr.msk.f32.mxu1 %vm4044_vm0, %v4043_v2 }
 0x3ea   :  { %3611 = vmatprep.subr.mxu1 %v4043_v2 }
 0x3eb   :  { %3612 = vmatpush3.msra.mxu1 %v4146_v23 }
 0x3ec   :  { %3613 = vmatprep.subr.mxu1 %v4043_v2 }
 0x3ed   :  { %3614 = vmatpush3.msra.mxu1 %v4153_v24 }
 0x3ee   :  { %3615 = vmatprep.subr.mxu1 %v4043_v2 }
 0x3ef   :  { %3616 = vmatpush3.msra.mxu1 %v4160_v25 }
 0x3f0   :  { %3631 = vmatprep.subr.mxu1 %v4043_v2 }
 0x4a8   :  { %v514_v6 = vpop.f32.mrf.mxu1 }
 0x4a9   :  { %v515_v7 = vadd.f32 %v514_v6, %v4292_v1 }
 0x4aa   :  { %v3592_v9 = vpop.f32.mrf.mxu1 }
 0x4ab   :  { %527 = vrot.lane.b32.xlu0 %v515_v7, %s4045_s29  ;;  %v518_v10 = vadd.f32 2.0, %v515_v7 }
 0x4ad   :  { %v519_v11 = vsub.f32 0.0, %v518_v10 }
 0x4af   :  { %v520_v12 = vmul.f32 1.442695, %v519_v11 }
 0x4b1   :  { %3957 = vpow2.f32 %v520_v12 }
 0x4be   :  { %v3958_v17 = vpop.eup %3957 }
 0x4bf   :  { %v522_v19 = vadd.f32 1.0, %v3958_v17 }
 0x4c1   :  { %3959 = vrcp.f32 %v522_v19 }
 0x4ce   :  { %v3960_v20 = vpop.eup %3959 }
 0x4cf   :  { %v525_v21 = vadd.f32 0.001, %v3960_v20 }
 0x4d1   :  { %3961 = vrcp.f32 %v525_v21 }
 0x4de   :  { %v3962_v22 = vpop.eup %3961 }
 0x51d   :  { %v528_v4 = vpop.permute.xlu0 %527 }
 0x51e   :  { %v530_v5 = vsub.f32 %v4099_v8, %v528_v4 }
 0x520   :  { %v532_v26 = vmul.f32 %v3962_v22, %v530_v5 }
 0x522   :  { %3596 = vmatmul.mubr.msk.f32.vlgmr.msra.gmra.mxu0 %vm52_vm1, %v532_v26 }
 0x523   :  { %3599 = vmatpush3.msra.mxu0 %v4078_v3  ;;  %3606 = vmatprep.mubr.msk.f32.mxu0 %vm4044_vm0, %v4043_v2 }
 0x524   :  { %3600 = vmatprep.subr.mxu0 %v4043_v2 }
 0x525   :  { %3601 = vmatpush3.msra.mxu0 %v4110_v13 }
 0x526   :  { %3602 = vmatprep.subr.mxu0 %v4043_v2 }
 0x527   :  { %3603 = vmatpush3.msra.mxu0 %v4117_v14 }
 0x528   :  { %3604 = vmatprep.subr.mxu0 %v4043_v2 }
 0x529   :  { %3605 = vmatpush3.msra.mxu0 %v4124_v15 }
 0x52a   :  { %3620 = vmatprep.subr.mxu0 %v4043_v2 }
 0x5e2   :  { %v602_v28 = vpop.f32.mrf.mxu0 }
 0x5e3   :  { %v603_v29 = vadd.f32 %v602_v28, %v4137_v18 }
 0x5e4   :  { %v3597_v30 = vpop.f32.mrf.mxu0 }
 0x5e5   :  { %v606_v31 = vmax.f32 %v603_v29, 0.0 }
 0x5e7   :  { %3607 = vmatmul.mubr.msk.f32.vlgmr.msra.gmra.mxu0 %vm131_vm2, %v606_v31 }
 0x5e8   :  { %3621 = vmatpush3.msra.mxu0 %v4175_v32  ;;  %3628 = vmatprep.mubr.msk.f32.mxu0 %vm4044_vm0, %v4043_v2 }
 0x5e9   :  { %3622 = vmatprep.subr.mxu0 %v4043_v2 }
 0x5ea   :  { %3623 = vmatpush3.msra.mxu0 %v4182_v33 }
 0x5eb   :  { %3624 = vmatprep.subr.mxu0 %v4043_v2 }
 0x5ec   :  { %3625 = vmatpush3.msra.mxu0 %v4189_v34 }
 0x5ed   :  { %3626 = vmatprep.subr.mxu0 %v4043_v2 }
 0x5ee   :  { %3627 = vmatpush3.msra.mxu0 %v4196_v35 }
 0x5ef   :  { %3642 = vmatprep.subr.mxu0 %v4043_v2 }
 0x6a7   :  { %v676_v37 = vpop.f32.mrf.mxu0 }
 0x6a8   :  { %v677_v39 = vadd.f32 %v676_v37, %v4166_v27 }
 0x6a9   :  { %v3608_v40 = vpop.f32.mrf.mxu0 }
 0x6aa   :  { %v680_v41 = vmax.f32 %v677_v39, 0.0 }
 0x6ac   :  { %3618 = vmatmul.mubr.msk.f32.vlgmr.msra.gmra.mxu1 %vm131_vm2, %v680_v41 }
 0x6ad   :  { %3632 = vmatpush3.msra.mxu1 %v4202_v36  ;;  %3639 = vmatprep.mubr.msk.f32.mxu1 %vm4044_vm0, %v4043_v2 }
 0x6ae   :  { %3633 = vmatprep.subr.mxu1 %v4043_v2 }
 0x6af   :  { %3634 = vmatpush3.msra.mxu1 %v4218_v44 }
 0x6b0   :  { %3635 = vmatprep.subr.mxu1 %v4043_v2 }
 0x6b1   :  { %3636 = vmatpush3.msra.mxu1 %v4225_v45 }
 0x6b2   :  { %3637 = vmatprep.subr.mxu1 %v4043_v2 }
 0x6b3   :  { %3638 = vmatpush3.msra.mxu1 %v4232_v46 }
 0x6b4   :  { %3658 = vmatprep.subr.mxu1 %v4043_v2 }
 0x76c   :  { %v750_v42 = vpop.f32.mrf.mxu1 }
 0x76d   :  { %v751_v43 = vadd.f32 %v750_v42, %v4209_v38 }
 0x76e   :  { %v3619_v48 = vpop.f32.mrf.mxu1 }
 0x76f   :  { %v754_v50 = vadd.f32 %v751_v43, %v603_v29 }
 0x771   :  { %v755_v51 = vmax.f32 %v754_v50, 0.0 }
 0x773   :  { %3629 = vmatmul.mubr.msk.f32.vlgmr.msra.gmra.mxu0 %vm131_vm2, %v755_v51 }
 0x774   :  { %3643 = vmatpush3.msra.mxu0 %v4238_v47  ;;  %3650 = vmatprep.mubr.msk.f32.mxu0 %vm4044_vm0, %v4043_v2 }
 0x775   :  { %3644 = vmatprep.subr.mxu0 %v4043_v2 }
 0x776   :  { %3645 = vmatpush3.msra.mxu0 %v4256_v54 }
 0x777   :  { %3646 = vmatprep.subr.mxu0 %v4043_v2 }
 0x778   :  { %3647 = vmatpush3.msra.mxu0 %v4263_v55 }
 0x779   :  { %3648 = vmatprep.subr.mxu0 %v4043_v2 }
 0x77a   :  { %3649 = vmatpush3.msra.mxu0 %v4270_v56 }
 0x77b   :  { %3653 = vmatprep.subr.mxu0 %v4043_v2 }
 0x833   :  { %v825_v52 = vpop.f32.mrf.mxu0 }
 0x834   :  { %v826_v53 = vadd.f32 %v825_v52, %v4245_v49 }
 0x835   :  { %v3630_v57 = vpop.f32.mrf.mxu0 }
 0x836   :  { %v829_v59 = vmax.f32 %v826_v53, 0.0 }
 0x838   :  { %3640 = vmatmul.mubr.msk.f32.vlgmr.msra.gmra.mxu1 %vm131_vm2, %v829_v59 }
 0x839   :  { %3659 = vmatpush3.msra.mxu1 %v4078_v3  ;;  %3666 = vmatprep.mubr.msk.f32.mxu1 %vm4044_vm0, %v4043_v2 }
 0x83a   :  { %3660 = vmatprep.subr.mxu1 %v4043_v2 }
 0x83b   :  { %3661 = vmatpush3.msra.mxu1 %v4110_v13 }
 0x83c   :  { %3662 = vmatprep.subr.mxu1 %v4043_v2 }
 0x83d   :  { %3663 = vmatpush3.msra.mxu1 %v4117_v14 }
 0x83e   :  { %3664 = vmatprep.subr.mxu1 %v4043_v2 }
 0x83f   :  { %3665 = vmatpush3.msra.mxu1 %v4124_v15 }
 0x840   :  { %3680 = vmatprep.subr.mxu1 %v4043_v2 }
 0x8f8   :  { %v899_v60 = vpop.f32.mrf.mxu1 }
 0x8f9   :  { %v900_v61 = vadd.f32 %v899_v60, %v4276_v58 }
 0x8fa   :  { %v3641_v62 = vpop.f32.mrf.mxu1 }
 0x8fb   :  { %v903_v63 = vadd.f32 %v900_v61, %v754_v50 }
 0x8fd   :  { %3651 = vmatmul.mubr.msk.f32.vlgmr.msra.gmra.mxu0 %vm131_vm2, %v903_v63 }
 0x8fe   :  { %3654 = vmatpush3.msra.mxu0 %v4070_v0  ;;  %3655 = vmatprep.mubr.msk.f32.mxu0 %vm4044_vm0, %v4043_v2 }
 0x8ff   :  { %3669 = vmatprep.subr.mxu0 %v4043_v2 }
 0x9bd   :  { %v973_v6 = vpop.f32.mrf.mxu0 }
 0x9be   :  { %v974_v7 = vadd.f32 %v973_v6, %v4292_v1 }
 0x9bf   :  { %v3652_v9 = vpop.f32.mrf.mxu0 }
 0x9c0   :  { %986 = vrot.lane.b32.xlu0 %v974_v7, %s4045_s29  ;;  %v977_v10 = vadd.f32 2.0, %v974_v7 }
 0x9c2   :  { %v978_v11 = vsub.f32 0.0, %v977_v10 }
 0x9c4   :  { %v979_v12 = vmul.f32 1.442695, %v978_v11 }
 0x9c6   :  { %3963 = vpow2.f32 %v979_v12 }
 0x9d3   :  { %v3964_v17 = vpop.eup %3963 }
 0x9d4   :  { %v981_v19 = vadd.f32 1.0, %v3964_v17 }
 0x9d6   :  { %3965 = vrcp.f32 %v981_v19 }
 0x9e3   :  { %v3966_v20 = vpop.eup %3965 }
 0x9e4   :  { %v984_v21 = vadd.f32 0.001, %v3966_v20 }
 0x9e6   :  { %3967 = vrcp.f32 %v984_v21 }
 0x9f3   :  { %v3968_v22 = vpop.eup %3967 }
 0xa32   :  { %v987_v4 = vpop.permute.xlu0 %986 }
 0xa33   :  { %v989_v5 = vsub.f32 %v4099_v8, %v987_v4 }
 0xa35   :  { %v991_v26 = vmul.f32 %v3968_v22, %v989_v5 }
 0xa37   :  { %3656 = vmatmul.mubr.msk.f32.vlgmr.msra.gmra.mxu0 %vm52_vm1, %v991_v26 }
 0xa38   :  { %3670 = vmatpush3.msra.mxu0 %v4130_v16  ;;  %3677 = vmatprep.mubr.msk.f32.mxu0 %vm4044_vm0, %v4043_v2 }
 0xa39   :  { %3671 = vmatprep.subr.mxu0 %v4043_v2 }
 0xa3a   :  { %3672 = vmatpush3.msra.mxu0 %v4146_v23 }
 0xa3b   :  { %3673 = vmatprep.subr.mxu0 %v4043_v2 }
 0xa3c   :  { %3674 = vmatpush3.msra.mxu0 %v4153_v24 }
 0xa3d   :  { %3675 = vmatprep.subr.mxu0 %v4043_v2 }
 0xa3e   :  { %3676 = vmatpush3.msra.mxu0 %v4160_v25 }
 0xa3f   :  { %3691 = vmatprep.subr.mxu0 %v4043_v2 }
 0xaf7   :  { %v1061_v28 = vpop.f32.mrf.mxu0 }
 0xaf8   :  { %v1062_v29 = vadd.f32 %v1061_v28, %v4137_v18 }
 0xaf9   :  { %v3657_v30 = vpop.f32.mrf.mxu0 }
 0xafa   :  { %v1065_v31 = vmax.f32 %v1062_v29, 0.0 }
 0xafc   :  { %3667 = vmatmul.mubr.msk.f32.vlgmr.msra.gmra.mxu1 %vm131_vm2, %v1065_v31 }
 0xafd   :  { %3681 = vmatpush3.msra.mxu1 %v4175_v32  ;;  %3688 = vmatprep.mubr.msk.f32.mxu1 %vm4044_vm0, %v4043_v2 }
 0xafe   :  { %3682 = vmatprep.subr.mxu1 %v4043_v2 }
 0xaff   :  { %3683 = vmatpush3.msra.mxu1 %v4182_v33 }
 0xb00   :  { %3684 = vmatprep.subr.mxu1 %v4043_v2 }
 0xb01   :  { %3685 = vmatpush3.msra.mxu1 %v4189_v34 }
 0xb02   :  { %3686 = vmatprep.subr.mxu1 %v4043_v2 }
 0xb03   :  { %3687 = vmatpush3.msra.mxu1 %v4196_v35 }
 0xb04   :  { %3702 = vmatprep.subr.mxu1 %v4043_v2 }
 0xbbc   :  { %v1135_v37 = vpop.f32.mrf.mxu1 }
 0xbbd   :  { %v1136_v39 = vadd.f32 %v1135_v37, %v4166_v27 }
 0xbbe   :  { %v3668_v40 = vpop.f32.mrf.mxu1 }
 0xbbf   :  { %v1139_v41 = vmax.f32 %v1136_v39, 0.0 }
 0xbc1   :  { %3678 = vmatmul.mubr.msk.f32.vlgmr.msra.gmra.mxu0 %vm131_vm2, %v1139_v41 }
 0xbc2   :  { %3692 = vmatpush3.msra.mxu0 %v4202_v36  ;;  %3699 = vmatprep.mubr.msk.f32.mxu0 %vm4044_vm0, %v4043_v2 }
 0xbc3   :  { %3693 = vmatprep.subr.mxu0 %v4043_v2 }
 0xbc4   :  { %3694 = vmatpush3.msra.mxu0 %v4218_v44 }
 0xbc5   :  { %3695 = vmatprep.subr.mxu0 %v4043_v2 }
 0xbc6   :  { %3696 = vmatpush3.msra.mxu0 %v4225_v45 }
 0xbc7   :  { %3697 = vmatprep.subr.mxu0 %v4043_v2 }
 0xbc8   :  { %3698 = vmatpush3.msra.mxu0 %v4232_v46 }
 0xbc9   :  { %3713 = vmatprep.subr.mxu0 %v4043_v2 }
 0xc81   :  { %v1209_v42 = vpop.f32.mrf.mxu0 }
 0xc82   :  { %v1210_v43 = vadd.f32 %v1209_v42, %v4209_v38 }
 0xc83   :  { %v3679_v48 = vpop.f32.mrf.mxu0 }
 0xc84   :  { %v1213_v50 = vadd.f32 %v1210_v43, %v1062_v29 }
 0xc86   :  { %v1214_v51 = vmax.f32 %v1213_v50, 0.0 }
 0xc88   :  { %3689 = vmatmul.mubr.msk.f32.vlgmr.msra.gmra.mxu1 %vm131_vm2, %v1214_v51 }
 0xc89   :  { %3703 = vmatpush3.msra.mxu1 %v4238_v47  ;;  %3710 = vmatprep.mubr.msk.f32.mxu1 %vm4044_vm0, %v4043_v2 }
 0xc8a   :  { %3704 = vmatprep.subr.mxu1 %v4043_v2 }
 0xc8b   :  { %3705 = vmatpush3.msra.mxu1 %v4256_v54 }
 0xc8c   :  { %3706 = vmatprep.subr.mxu1 %v4043_v2 }
 0xc8d   :  { %3707 = vmatpush3.msra.mxu1 %v4263_v55 }
 0xc8e   :  { %3708 = vmatprep.subr.mxu1 %v4043_v2 }
 0xc8f   :  { %3709 = vmatpush3.msra.mxu1 %v4270_v56 }
 0xc90   :  { %3729 = vmatprep.subr.mxu1 %v4043_v2 }
 0xd48   :  { %v1284_v52 = vpop.f32.mrf.mxu1 }
 0xd49   :  { %v1285_v53 = vadd.f32 %v1284_v52, %v4245_v49 }
 0xd4a   :  { %v3690_v57 = vpop.f32.mrf.mxu1 }
 0xd4b   :  { %v1288_v59 = vmax.f32 %v1285_v53, 0.0 }
 0xd4d   :  { %3700 = vmatmul.mubr.msk.f32.vlgmr.msra.gmra.mxu0 %vm131_vm2, %v1288_v59 }
 0xd4e   :  { %3714 = vmatpush3.msra.mxu0 %v4070_v0  ;;  %3715 = vmatprep.mubr.msk.f32.mxu0 %vm4044_vm0, %v4043_v2 }
 0xd4f   :  { %3718 = vmatprep.subr.mxu0 %v4043_v2 }
 0xe0d   :  { %v1358_v60 = vpop.f32.mrf.mxu0 }
 0xe0e   :  { %v1359_v61 = vadd.f32 %v1358_v60, %v4276_v58 }
 0xe0f   :  { %v3701_v62 = vpop.f32.mrf.mxu0 }
 0xe10   :  { %v1362_v63 = vadd.f32 %v1359_v61, %v1213_v50 }
 0xe12   :  { %3711 = vmatmul.mubr.msk.f32.vlgmr.msra.gmra.mxu1 %vm131_vm2, %v1362_v63 }
 0xe13   :  { %3730 = vmatpush3.msra.mxu1 %v4130_v16  ;;  %3737 = vmatprep.mubr.msk.f32.mxu1 %vm4044_vm0, %v4043_v2 }
 0xe14   :  { %3731 = vmatprep.subr.mxu1 %v4043_v2 }
 0xe15   :  { %3732 = vmatpush3.msra.mxu1 %v4146_v23 }
 0xe16   :  { %3733 = vmatprep.subr.mxu1 %v4043_v2 }
 0xe17   :  { %3734 = vmatpush3.msra.mxu1 %v4153_v24 }
 0xe18   :  { %3735 = vmatprep.subr.mxu1 %v4043_v2 }
 0xe19   :  { %3736 = vmatpush3.msra.mxu1 %v4160_v25 }
 0xe1a   :  { %3751 = vmatprep.subr.mxu1 %v4043_v2 }
 0xed2   :  { %v1432_v6 = vpop.f32.mrf.mxu1 }
 0xed3   :  { %v1433_v7 = vadd.f32 %v1432_v6, %v4292_v1 }
 0xed4   :  { %v3712_v9 = vpop.f32.mrf.mxu1 }
 0xed5   :  { %1445 = vrot.lane.b32.xlu1 %v1433_v7, %s4045_s29  ;;  %v1436_v10 = vadd.f32 2.0, %v1433_v7 }
 0xed7   :  { %v1437_v11 = vsub.f32 0.0, %v1436_v10 }
 0xed9   :  { %v1438_v12 = vmul.f32 1.442695, %v1437_v11 }
 0xedb   :  { %3969 = vpow2.f32 %v1438_v12 }
 0xee8   :  { %v3970_v17 = vpop.eup %3969 }
 0xee9   :  { %v1440_v19 = vadd.f32 1.0, %v3970_v17 }
 0xeeb   :  { %3971 = vrcp.f32 %v1440_v19 }
 0xef8   :  { %v3972_v20 = vpop.eup %3971 }
 0xef9   :  { %v1443_v21 = vadd.f32 0.001, %v3972_v20 }
 0xefb   :  { %3973 = vrcp.f32 %v1443_v21 }
 0xf08   :  { %v3974_v22 = vpop.eup %3973 }
 0xf47   :  { %v1446_v4 = vpop.permute.xlu1 %1445 }
 0xf48   :  { %v1448_v5 = vsub.f32 %v4099_v8, %v1446_v4 }
 0xf4a   :  { %v1450_v26 = vmul.f32 %v3974_v22, %v1448_v5 }
 0xf4c   :  { %3716 = vmatmul.mubr.msk.f32.vlgmr.msra.gmra.mxu0 %vm52_vm1, %v1450_v26 }
 0xf4d   :  { %3719 = vmatpush3.msra.mxu0 %v4078_v3  ;;  %3726 = vmatprep.mubr.msk.f32.mxu0 %vm4044_vm0, %v4043_v2 }
 0xf4e   :  { %3720 = vmatprep.subr.mxu0 %v4043_v2 }
 0xf4f   :  { %3721 = vmatpush3.msra.mxu0 %v4110_v13 }
 0xf50   :  { %3722 = vmatprep.subr.mxu0 %v4043_v2 }
 0xf51   :  { %3723 = vmatpush3.msra.mxu0 %v4117_v14 }
 0xf52   :  { %3724 = vmatprep.subr.mxu0 %v4043_v2 }
 0xf53   :  { %3725 = vmatpush3.msra.mxu0 %v4124_v15 }
 0xf54   :  { %3740 = vmatprep.subr.mxu0 %v4043_v2 }
0x100c   :  { %v1520_v28 = vpop.f32.mrf.mxu0 }
0x100d   :  { %v1521_v29 = vadd.f32 %v1520_v28, %v4137_v18 }
0x100e   :  { %v3717_v30 = vpop.f32.mrf.mxu0 }
0x100f   :  { %v1524_v31 = vmax.f32 %v1521_v29, 0.0 }
0x1011   :  { %3727 = vmatmul.mubr.msk.f32.vlgmr.msra.gmra.mxu0 %vm131_vm2, %v1524_v31 }
0x1012   :  { %3741 = vmatpush3.msra.mxu0 %v4175_v32  ;;  %3748 = vmatprep.mubr.msk.f32.mxu0 %vm4044_vm0, %v4043_v2 }
0x1013   :  { %3742 = vmatprep.subr.mxu0 %v4043_v2 }
0x1014   :  { %3743 = vmatpush3.msra.mxu0 %v4182_v33 }
0x1015   :  { %3744 = vmatprep.subr.mxu0 %v4043_v2 }
0x1016   :  { %3745 = vmatpush3.msra.mxu0 %v4189_v34 }
0x1017   :  { %3746 = vmatprep.subr.mxu0 %v4043_v2 }
0x1018   :  { %3747 = vmatpush3.msra.mxu0 %v4196_v35 }
0x1019   :  { %3762 = vmatprep.subr.mxu0 %v4043_v2 }
0x10d1   :  { %v1594_v37 = vpop.f32.mrf.mxu0 }
0x10d2   :  { %v1595_v39 = vadd.f32 %v1594_v37, %v4166_v27 }
0x10d3   :  { %v3728_v40 = vpop.f32.mrf.mxu0 }
0x10d4   :  { %v1598_v41 = vmax.f32 %v1595_v39, 0.0 }
0x10d6   :  { %3738 = vmatmul.mubr.msk.f32.vlgmr.msra.gmra.mxu1 %vm131_vm2, %v1598_v41 }
0x10d7   :  { %3752 = vmatpush3.msra.mxu1 %v4202_v36  ;;  %3759 = vmatprep.mubr.msk.f32.mxu1 %vm4044_vm0, %v4043_v2 }
0x10d8   :  { %3753 = vmatprep.subr.mxu1 %v4043_v2 }
0x10d9   :  { %3754 = vmatpush3.msra.mxu1 %v4218_v44 }
0x10da   :  { %3755 = vmatprep.subr.mxu1 %v4043_v2 }
0x10db   :  { %3756 = vmatpush3.msra.mxu1 %v4225_v45 }
0x10dc   :  { %3757 = vmatprep.subr.mxu1 %v4043_v2 }
0x10dd   :  { %3758 = vmatpush3.msra.mxu1 %v4232_v46 }
0x10de   :  { %3773 = vmatprep.subr.mxu1 %v4043_v2 }
0x1196   :  { %v1668_v42 = vpop.f32.mrf.mxu1 }
0x1197   :  { %v1669_v43 = vadd.f32 %v1668_v42, %v4209_v38 }
0x1198   :  { %v3739_v48 = vpop.f32.mrf.mxu1 }
0x1199   :  { %v1672_v50 = vadd.f32 %v1669_v43, %v1521_v29 }
0x119b   :  { %v1673_v51 = vmax.f32 %v1672_v50, 0.0 }
0x119d   :  { %3749 = vmatmul.mubr.msk.f32.vlgmr.msra.gmra.mxu0 %vm131_vm2, %v1673_v51 }
0x119e   :  { %3763 = vmatpush3.msra.mxu0 %v4238_v47  ;;  %3770 = vmatprep.mubr.msk.f32.mxu0 %vm4044_vm0, %v4043_v2 }
0x119f   :  { %3764 = vmatprep.subr.mxu0 %v4043_v2 }
0x11a0   :  { %3765 = vmatpush3.msra.mxu0 %v4256_v54 }
0x11a1   :  { %3766 = vmatprep.subr.mxu0 %v4043_v2 }
0x11a2   :  { %3767 = vmatpush3.msra.mxu0 %v4263_v55 }
0x11a3   :  { %3768 = vmatprep.subr.mxu0 %v4043_v2 }
0x11a4   :  { %3769 = vmatpush3.msra.mxu0 %v4270_v56 }
0x11a5   :  { %3789 = vmatprep.subr.mxu0 %v4043_v2 }
0x125d   :  { %v1743_v52 = vpop.f32.mrf.mxu0 }
0x125e   :  { %v1744_v53 = vadd.f32 %v1743_v52, %v4245_v49 }
0x125f   :  { %v3750_v57 = vpop.f32.mrf.mxu0 }
0x1260   :  { %v1747_v59 = vmax.f32 %v1744_v53, 0.0 }
0x1262   :  { %3760 = vmatmul.mubr.msk.f32.vlgmr.msra.gmra.mxu1 %vm131_vm2, %v1747_v59 }
0x1263   :  { %3774 = vmatpush3.msra.mxu1 %v4070_v0  ;;  %3775 = vmatprep.mubr.msk.f32.mxu1 %vm4044_vm0, %v4043_v2 }
0x1264   :  { %3778 = vmatprep.subr.mxu1 %v4043_v2 }
0x1322   :  { %v1817_v60 = vpop.f32.mrf.mxu1 }
0x1323   :  { %v1818_v61 = vadd.f32 %v1817_v60, %v4276_v58 }
0x1324   :  { %v3761_v62 = vpop.f32.mrf.mxu1 }
0x1325   :  { %v1821_v63 = vadd.f32 %v1818_v61, %v1672_v50 }
0x1327   :  { %3771 = vmatmul.mubr.msk.f32.vlgmr.msra.gmra.mxu0 %vm131_vm2, %v1821_v63 }
0x1328   :  { %3790 = vmatpush3.msra.mxu0 %v4130_v16  ;;  %3797 = vmatprep.mubr.msk.f32.mxu0 %vm4044_vm0, %v4043_v2 }
0x1329   :  { %3791 = vmatprep.subr.mxu0 %v4043_v2 }
0x132a   :  { %3792 = vmatpush3.msra.mxu0 %v4146_v23 }
0x132b   :  { %3793 = vmatprep.subr.mxu0 %v4043_v2 }
0x132c   :  { %3794 = vmatpush3.msra.mxu0 %v4153_v24 }
0x132d   :  { %3795 = vmatprep.subr.mxu0 %v4043_v2 }
0x132e   :  { %3796 = vmatpush3.msra.mxu0 %v4160_v25 }
0x132f   :  { %3811 = vmatprep.subr.mxu0 %v4043_v2 }
0x13e7   :  { %v1891_v6 = vpop.f32.mrf.mxu0 }
0x13e8   :  { %v1892_v7 = vadd.f32 %v1891_v6, %v4292_v1 }
0x13e9   :  { %v3772_v9 = vpop.f32.mrf.mxu0 }
0x13ea   :  { %1904 = vrot.lane.b32.xlu1 %v1892_v7, %s4045_s29  ;;  %v1895_v10 = vadd.f32 2.0, %v1892_v7 }
0x13ec   :  { %v1896_v11 = vsub.f32 0.0, %v1895_v10 }
0x13ee   :  { %v1897_v12 = vmul.f32 1.442695, %v1896_v11 }
0x13f0   :  { %3975 = vpow2.f32 %v1897_v12 }
0x13fd   :  { %v3976_v17 = vpop.eup %3975 }
0x13fe   :  { %v1899_v19 = vadd.f32 1.0, %v3976_v17 }
0x1400   :  { %3977 = vrcp.f32 %v1899_v19 }
0x140d   :  { %v3978_v20 = vpop.eup %3977 }
0x140e   :  { %v1902_v21 = vadd.f32 0.001, %v3978_v20  ;;  %v4573_v20 = vld [vmem:[%s4744_s1 + $0x20] sm:$0xff] }
0x1410   :  { %3979 = vrcp.f32 %v1902_v21 }
0x141d   :  { %v3980_v22 = vpop.eup %3979 }
0x145c   :  { %v1905_v4 = vpop.permute.xlu1 %1904 }
0x145d   :  { %v1907_v5 = vsub.f32 %v4099_v8, %v1905_v4 }
0x145f   :  { %v1909_v26 = vmul.f32 %v3980_v22, %v1907_v5 }
0x1461   :  { %3776 = vmatmul.mubr.msk.f32.vlgmr.msra.gmra.mxu1 %vm52_vm1, %v1909_v26 }
0x1462   :  { %3779 = vmatpush3.msra.mxu1 %v4078_v3  ;;  %3786 = vmatprep.mubr.msk.f32.mxu1 %vm4044_vm0, %v4043_v2 }
0x1463   :  { %3780 = vmatprep.subr.mxu1 %v4043_v2 }
0x1464   :  { %3781 = vmatpush3.msra.mxu1 %v4110_v13 }
0x1465   :  { %3782 = vmatprep.subr.mxu1 %v4043_v2 }
0x1466   :  { %3783 = vmatpush3.msra.mxu1 %v4117_v14 }
0x1467   :  { %3784 = vmatprep.subr.mxu1 %v4043_v2 }
0x1468   :  { %3785 = vmatpush3.msra.mxu1 %v4124_v15 }
0x1469   :  { %3800 = vmatprep.subr.mxu1 %v4043_v2 }
0x1521   :  { %v1979_v28 = vpop.f32.mrf.mxu1 }
0x1522   :  { %v1980_v3 = vadd.f32 %v1979_v28, %v4137_v18 }
0x1523   :  { %v3777_v29 = vpop.f32.mrf.mxu1 }
0x1524   :  { %v1983_v30 = vmax.f32 %v1980_v3, 0.0  ;;  %v4002_v29 = vld [vmem:[%s4744_s1 + $0x38] sm:$0xff] }
0x1526   :  { %3787 = vmatmul.mubr.msk.f32.vlgmr.msra.gmra.mxu1 %vm131_vm2, %v1983_v30  ;;  %v4003_v30 = vld [vmem:[%s4744_s1 + $0x30] sm:$0xff] }
0x1527   :  { %3801 = vmatpush3.msra.mxu1 %v4175_v32  ;;  %3808 = vmatprep.mubr.msk.f32.mxu1 %vm4044_vm0, %v4043_v2 }
0x1528   :  { %3802 = vmatprep.subr.mxu1 %v4043_v2 }
0x1529   :  { %3803 = vmatpush3.msra.mxu1 %v4182_v33 }
0x152a   :  { %3804 = vmatprep.subr.mxu1 %v4043_v2 }
0x152b   :  { %3805 = vmatpush3.msra.mxu1 %v4189_v34 }
0x152c   :  { %3806 = vmatprep.subr.mxu1 %v4043_v2 }
0x152d   :  { %3807 = vmatpush3.msra.mxu1 %v4196_v35 }
0x152e   :  { %3822 = vmatprep.subr.mxu1 %v4043_v2 }
0x15e6   :  { %v2053_v31 = vpop.f32.mrf.mxu1 }
0x15e7   :  { %v2054_v37 = vadd.f32 %v2053_v31, %v4166_v27  ;;  %v4004_v31 = vld [vmem:[%s4744_s1 + $0x28] sm:$0xff] }
0x15e8   :  { %v3788_v39 = vpop.f32.mrf.mxu1 }
0x15e9   :  { %v2057_v40 = vmax.f32 %v2054_v37, 0.0 }
0x15eb   :  { %3798 = vmatmul.mubr.msk.f32.vlgmr.msra.gmra.mxu0 %vm131_vm2, %v2057_v40 }
0x15ec   :  { %3812 = vmatpush3.msra.mxu0 %v4202_v36  ;;  %3819 = vmatprep.mubr.msk.f32.mxu0 %vm4044_vm0, %v4043_v2 }
0x15ed   :  { %3813 = vmatprep.subr.mxu0 %v4043_v2 }
0x15ee   :  { %3814 = vmatpush3.msra.mxu0 %v4218_v44 }
0x15ef   :  { %3815 = vmatprep.subr.mxu0 %v4043_v2 }
0x15f0   :  { %3816 = vmatpush3.msra.mxu0 %v4225_v45 }
0x15f1   :  { %3817 = vmatprep.subr.mxu0 %v4043_v2 }
0x15f2   :  { %3818 = vmatpush3.msra.mxu0 %v4232_v46 }
0x15f3   :  { %3833 = vmatprep.subr.mxu0 %v4043_v2 }
0x16ab   :  { %v2127_v41 = vpop.f32.mrf.mxu0 }
0x16ac   :  { %v2128_v42 = vadd.f32 %v2127_v41, %v4209_v38 }
0x16ad   :  { %v3799_v43 = vpop.f32.mrf.mxu0 }
0x16ae   :  { %v2131_v48 = vadd.f32 %v2128_v42, %v1980_v3  ;;  %v4001_v3 = vld [vmem:[%s4744_s1 + $0x40] sm:$0xff] }
0x16b0   :  { %v2132_v50 = vmax.f32 %v2131_v48, 0.0 }
0x16b2   :  { %3809 = vmatmul.mubr.msk.f32.vlgmr.msra.gmra.mxu1 %vm131_vm2, %v2132_v50 }
0x16b3   :  { %3823 = vmatpush3.msra.mxu1 %v4238_v47  ;;  %3830 = vmatprep.mubr.msk.f32.mxu1 %vm4044_vm0, %v4043_v2 }
0x16b4   :  { %3824 = vmatprep.subr.mxu1 %v4043_v2 }
0x16b5   :  { %3825 = vmatpush3.msra.mxu1 %v4256_v54 }
0x16b6   :  { %3826 = vmatprep.subr.mxu1 %v4043_v2 }
0x16b7   :  { %3827 = vmatpush3.msra.mxu1 %v4263_v55 }
0x16b8   :  { %3828 = vmatprep.subr.mxu1 %v4043_v2 }
0x16b9   :  { %3829 = vmatpush3.msra.mxu1 %v4270_v56 }
0x16ba   :  { %3849 = vmatprep.subr.mxu1 %v4043_v2 }
0x1772   :  { %v2202_v51 = vpop.f32.mrf.mxu1 }
0x1773   :  { %v2203_v52 = vadd.f32 %v2202_v51, %v4245_v49 }
0x1774   :  { %v3810_v53 = vpop.f32.mrf.mxu1 }
0x1775   :  { %v2206_v57 = vmax.f32 %v2203_v52, 0.0 }
0x1777   :  { %3820 = vmatmul.mubr.msk.f32.vlgmr.msra.gmra.mxu0 %vm131_vm2, %v2206_v57  ;;  %v4654_v57 = vld [vmem:[%s4743_s0] sm:$0xff] }
0x1778   :  { %3834 = vmatpush3.msra.mxu0 %v4070_v0  ;;  %3835 = vmatprep.mubr.msk.f32.mxu0 %vm4044_vm0, %v4043_v2 }
0x1779   :  { %3838 = vmatprep.subr.mxu0 %v4043_v2 }
0x1837   :  { %v2276_v59 = vpop.f32.mrf.mxu0 }
0x1838   :  { %v2277_v60 = vadd.f32 %v2276_v59, %v4276_v58 }
0x1839   :  { %v3821_v61 = vpop.f32.mrf.mxu0 }
0x183a   :  { %v2280_v62 = vadd.f32 %v2277_v60, %v2131_v48 }
0x183c   :  { %3831 = vmatmul.mubr.msk.f32.vlgmr.msra.gmra.mxu1 %vm131_vm2, %v2280_v62  ;;  %v4006_v62 = vld [vmem:[%s4744_s1 + $0x18] sm:$0xff] }
0x183d   :  { %3850 = vmatpush3.msra.mxu1 %v4130_v16  ;;  %3857 = vmatprep.mubr.msk.f32.mxu1 %vm4044_vm0, %v4043_v2 }
0x183e   :  { %3851 = vmatprep.subr.mxu1 %v4043_v2 }
0x183f   :  { %3852 = vmatpush3.msra.mxu1 %v4146_v23 }
0x1840   :  { %3853 = vmatprep.subr.mxu1 %v4043_v2 }
0x1841   :  { %3854 = vmatpush3.msra.mxu1 %v4153_v24 }
0x1842   :  { %3855 = vmatprep.subr.mxu1 %v4043_v2 }
0x1843   :  { %3856 = vmatpush3.msra.mxu1 %v4160_v25 }
0x1844   :  { %3871 = vmatprep.subr.mxu1 %v4043_v2 }
0x18fc   :  { %v2350_v0 = vpop.f32.mrf.mxu1 }
0x18fd   :  { %v2351_v16 = vadd.f32 %v2350_v0, %v4292_v1  ;;  %v4007_v0 = vld [vmem:[%s4744_s1 + $0x10] sm:$0xff] }
0x18fe   :  { %v3832_v63 = vpop.f32.mrf.mxu1 }
0x18ff   :  { %2363 = vrot.lane.b32.xlu0 %v2351_v16, %s4045_s29  ;;  %v2354_v6 = vadd.f32 2.0, %v2351_v16  ;;  %v4008_v16 = vld [vmem:[%s4744_s1 + $0x8] sm:$0xff] }
0x1901   :  { %v2355_v7 = vsub.f32 0.0, %v2354_v6 }
0x1903   :  { %v2356_v9 = vmul.f32 1.442695, %v2355_v7 }
0x1905   :  { %3981 = vpow2.f32 %v2356_v9 }
0x1912   :  { %v3982_v23 = vpop.eup %3981 }
0x1913   :  { %v2358_v10 = vadd.f32 1.0, %v3982_v23  ;;  %v4009_v23 = vld [vmem:[%s4744_s1 + $0x60] sm:$0xff] }
0x1915   :  { %3983 = vrcp.f32 %v2358_v10  ;;  %v4010_v10 = vld [vmem:[%s4744_s1 + $0x58] sm:$0xff] }
0x1922   :  { %v3984_v24 = vpop.eup %3983 }
0x1923   :  { %v2361_v11 = vadd.f32 0.001, %v3984_v24  ;;  %v4012_v24 = vld [vmem:[%s4744_s1 + $0x48] sm:$0xff] }
0x1925   :  { %3985 = vrcp.f32 %v2361_v11 }
0x1932   :  { %v3986_v17 = vpop.eup %3985 }
0x1971   :  { %v2364_v12 = vpop.permute.xlu0 %2363 }
0x1972   :  { %v2366_v25 = vsub.f32 %v4099_v8, %v2364_v12 }
0x1974   :  { %v2368_v19 = vmul.f32 %v3986_v17, %v2366_v25 }
0x1976   :  { %3836 = vmatmul.mubr.msk.f32.vlgmr.msra.gmra.mxu0 %vm52_vm1, %v2368_v19  ;;  %v4013_v19 = vld [vmem:[%s4744_s1 + $0x80] sm:$0xff] }
0x1977   :  { %3839 = vmatpush3.msra.mxu0 %v4573_v20  ;;  %3846 = vmatprep.mubr.msk.f32.mxu0 %vm4044_vm0, %v4043_v2 }
0x1978   :  { %3840 = vmatprep.subr.mxu0 %v4043_v2 }
0x1979   :  { %3841 = vmatpush3.msra.mxu0 %v4110_v13 }
0x197a   :  { %3842 = vmatprep.subr.mxu0 %v4043_v2 }
0x197b   :  { %3843 = vmatpush3.msra.mxu0 %v4117_v14 }
0x197c   :  { %3844 = vmatprep.subr.mxu0 %v4043_v2 }
0x197d   :  { %3845 = vmatpush3.msra.mxu0 %v4124_v15 }
0x197e   :  { %3860 = vmatprep.subr.mxu0 %v4043_v2 }
0x1a36   :  { %v2438_v8 = vpop.f32.mrf.mxu0 }
0x1a37   :  { %v2439_v21 = vadd.f32 %v2438_v8, %v4137_v18  ;;  %v4016_v8 = vld [vmem:[%s4744_s1 + $0x68] sm:$0xff] }
0x1a38   :  { %v3837_v4 = vpop.f32.mrf.mxu0 }
0x1a39   :  { %v2442_v5 = vmax.f32 %v2439_v21, 0.0 }
0x1a3b   :  { %3847 = vmatmul.mubr.msk.f32.vlgmr.msra.gmra.mxu0 %vm131_vm2, %v2442_v5 }
0x1a3c   :  { %3861 = vmatpush3.msra.mxu0 %v4175_v32  ;;  %3868 = vmatprep.mubr.msk.f32.mxu0 %vm4044_vm0, %v4043_v2 }
0x1a3d   :  { %3862 = vmatprep.subr.mxu0 %v4043_v2 }
0x1a3e   :  { %3863 = vmatpush3.msra.mxu0 %v4182_v33 }
0x1a3f   :  { %3864 = vmatprep.subr.mxu0 %v4043_v2 }
0x1a40   :  { %3865 = vmatpush3.msra.mxu0 %v4189_v34 }
0x1a41   :  { %3866 = vmatprep.subr.mxu0 %v4043_v2 }
0x1a42   :  { %3867 = vmatpush3.msra.mxu0 %v4196_v35 }
0x1a43   :  { %3882 = vmatprep.subr.mxu0 %v4043_v2 }
0x1afb   :  { %v2512_v13 = vpop.f32.mrf.mxu0 }
0x1afc   :  { %v2513_v14 = vadd.f32 %v2512_v13, %v4166_v27 }
0x1afd   :  { %v3848_v15 = vpop.f32.mrf.mxu0 }
0x1afe   :  { %v2516_v32 = vmax.f32 %v2513_v14, 0.0  ;;  %v4017_v15 = vld [vmem:[%s4744_s1 + $0xa0] sm:$0xff] }
0x1b00   :  { %3858 = vmatmul.mubr.msk.f32.vlgmr.msra.gmra.mxu1 %vm131_vm2, %v2516_v32  ;;  %v4018_v32 = vld [vmem:[%s4744_s1 + $0x98] sm:$0xff] }
0x1b01   :  { %3872 = vmatpush3.msra.mxu1 %v4202_v36  ;;  %3879 = vmatprep.mubr.msk.f32.mxu1 %vm4044_vm0, %v4043_v2 }
0x1b02   :  { %3873 = vmatprep.subr.mxu1 %v4043_v2 }
0x1b03   :  { %3874 = vmatpush3.msra.mxu1 %v4218_v44 }
0x1b04   :  { %3875 = vmatprep.subr.mxu1 %v4043_v2 }
0x1b05   :  { %3876 = vmatpush3.msra.mxu1 %v4225_v45 }
0x1b06   :  { %3877 = vmatprep.subr.mxu1 %v4043_v2 }
0x1b07   :  { %3878 = vmatpush3.msra.mxu1 %v4232_v46 }
0x1b08   :  { %3893 = vmatprep.subr.mxu1 %v4043_v2 }
0x1bc0   :  { %v2586_v33 = vpop.f32.mrf.mxu1 }
0x1bc1   :  { %v2587_v34 = vadd.f32 %v2586_v33, %v4209_v38  ;;  %v4020_v33 = vld [vmem:[%s4744_s1 + $0x88] sm:$0xff] }
0x1bc2   :  { %v3859_v35 = vpop.f32.mrf.mxu1 }
0x1bc3   :  { %v2590_v36 = vadd.f32 %v2587_v34, %v2439_v21 }
0x1bc5   :  { %v2591_v22 = vmax.f32 %v2590_v36, 0.0 }
0x1bc7   :  { %3869 = vmatmul.mubr.msk.f32.vlgmr.msra.gmra.mxu0 %vm131_vm2, %v2591_v22 }
0x1bc8   :  { %3883 = vmatpush3.msra.mxu0 %v4238_v47  ;;  %3890 = vmatprep.mubr.msk.f32.mxu0 %vm4044_vm0, %v4043_v2 }
0x1bc9   :  { %3884 = vmatprep.subr.mxu0 %v4043_v2 }
0x1bca   :  { %3885 = vmatpush3.msra.mxu0 %v4256_v54  ;;  %v4000_v54 = vld [vmem:[%s4744_s1] sm:$0xff] }
0x1bcb   :  { %3886 = vmatprep.subr.mxu0 %v4043_v2 }
0x1bcc   :  { %3887 = vmatpush3.msra.mxu0 %v4263_v55 }
0x1bcd   :  { %3888 = vmatprep.subr.mxu0 %v4043_v2 }
0x1bce   :  { %3889 = vmatpush3.msra.mxu0 %v4270_v56 }
0x1bcf   :  { %3909 = vmatprep.subr.mxu0 %v4043_v2 }
0x1c87   :  { %v2661_v44 = vpop.f32.mrf.mxu0 }
0x1c88   :  { %v2662_v45 = vadd.f32 %v2661_v44, %v4245_v49 }
0x1c89   :  { %v3870_v46 = vpop.f32.mrf.mxu0 }
0x1c8a   :  { %v2665_v47 = vmax.f32 %v2662_v45, 0.0 }
0x1c8c   :  { %3880 = vmatmul.mubr.msk.f32.vlgmr.msra.gmra.mxu1 %vm131_vm2, %v2665_v47 }
0x1c8d   :  { %3894 = vmatpush3.msra.mxu1 %v4000_v54  ;;  %3895 = vmatprep.mubr.msk.f32.mxu1 %vm4044_vm0, %v4043_v2 }
0x1c8e   :  { %3898 = vmatprep.subr.mxu1 %v4043_v2 }
0x1d4c   :  { %v2735_v55 = vpop.f32.mrf.mxu1 }
0x1d4d   :  { %v2736_v56 = vadd.f32 %v2735_v55, %v4276_v58 }
0x1d4e   :  { %v3881_v26 = vpop.f32.mrf.mxu1 }
0x1d4f   :  { %v2739_v28 = vadd.f32 %v2736_v56, %v2590_v36 }
0x1d51   :  { %3891 = vmatmul.mubr.msk.f32.vlgmr.msra.gmra.mxu0 %vm131_vm2, %v2739_v28 }
0x1d52   :  { %3910 = vmatpush3.msra.mxu0 %v4001_v3  ;;  %3917 = vmatprep.mubr.msk.f32.mxu0 %vm4044_vm0, %v4043_v2 }
0x1d53   :  { %3911 = vmatprep.subr.mxu0 %v4043_v2 }
0x1d54   :  { %3912 = vmatpush3.msra.mxu0 %v4002_v29 }
0x1d55   :  { %3913 = vmatprep.subr.mxu0 %v4043_v2 }
0x1d56   :  { %3914 = vmatpush3.msra.mxu0 %v4003_v30 }
0x1d57   :  { %3915 = vmatprep.subr.mxu0 %v4043_v2 }
0x1d58   :  { %3916 = vmatpush3.msra.mxu0 %v4004_v31 }
0x1d59   :  { %3931 = vmatprep.subr.mxu0 %v4043_v2 }
0x1e11   :  { %v2809_v37 = vpop.f32.mrf.mxu0 }
0x1e12   :  { %v2810_v39 = vadd.f32 %v2809_v37, %v4292_v1 }
0x1e13   :  { %v3892_v40 = vpop.f32.mrf.mxu0 }
0x1e14   :  { %2822 = vrot.lane.b32.xlu1 %v2810_v39, %s4045_s29  ;;  %v2813_v41 = vadd.f32 2.0, %v2810_v39 }
0x1e16   :  { %v2814_v42 = vsub.f32 0.0, %v2813_v41 }
0x1e18   :  { %v2815_v43 = vmul.f32 1.442695, %v2814_v42 }
0x1e1a   :  { %3987 = vpow2.f32 %v2815_v43 }
0x1e27   :  { %v3988_v48 = vpop.eup %3987 }
0x1e28   :  { %v2817_v50 = vadd.f32 1.0, %v3988_v48 }
0x1e2a   :  { %3989 = vrcp.f32 %v2817_v50 }
0x1e37   :  { %v3990_v51 = vpop.eup %3989 }
0x1e38   :  { %v2820_v52 = vadd.f32 0.001, %v3990_v51 }
0x1e3a   :  { %3991 = vrcp.f32 %v2820_v52 }
0x1e47   :  { %v3992_v60 = vpop.eup %3991 }
0x1e86   :  { %v2823_v53 = vpop.permute.xlu1 %2822 }
0x1e87   :  { %v2825_v59 = vsub.f32 %v4654_v57, %v2823_v53 }
0x1e89   :  { %v2827_v61 = vmul.f32 %v3992_v60, %v2825_v59 }
0x1e8b   :  { %3896 = vmatmul.mubr.msk.f32.vlgmr.msra.gmra.mxu1 %vm52_vm1, %v2827_v61 }
0x1e8c   :  { %3899 = vmatpush3.msra.mxu1 %v4573_v20  ;;  %3906 = vmatprep.mubr.msk.f32.mxu1 %vm4044_vm0, %v4043_v2  ;;  %v4014_v20 = vld [vmem:[%s4744_s1 + $0x78] sm:$0xff] }
0x1e8d   :  { %3900 = vmatprep.subr.mxu1 %v4043_v2 }
0x1e8e   :  { %3901 = vmatpush3.msra.mxu1 %v4006_v62 }
0x1e8f   :  { %3902 = vmatprep.subr.mxu1 %v4043_v2 }
0x1e90   :  { %3903 = vmatpush3.msra.mxu1 %v4007_v0 }
0x1e91   :  { %3904 = vmatprep.subr.mxu1 %v4043_v2 }
0x1e92   :  { %3905 = vmatpush3.msra.mxu1 %v4008_v16 }
0x1e93   :  { %3920 = vmatprep.subr.mxu1 %v4043_v2 }
0x1f4b   :  { %v2897_v63 = vpop.f32.mrf.mxu1 }
0x1f4c   :  { %v2898_v6 = vadd.f32 %v2897_v63, %v4137_v18  ;;  %v4011_v18 = vld [vmem:[%s4744_s1 + $0x50] sm:$0xff] }
0x1f4d   :  { %v3897_v7 = vpop.f32.mrf.mxu1 }
0x1f4e   :  { %v2901_v9 = vmax.f32 %v2898_v6, 0.0 }
0x1f50   :  { %3907 = vmatmul.mubr.msk.f32.vlgmr.msra.gmra.mxu1 %vm131_vm2, %v2901_v9 }
0x1f51   :  { %3921 = vmatpush3.msra.mxu1 %v4009_v23  ;;  %3928 = vmatprep.mubr.msk.f32.mxu1 %vm4044_vm0, %v4043_v2 }
0x1f52   :  { %3922 = vmatprep.subr.mxu1 %v4043_v2 }
0x1f53   :  { %3923 = vmatpush3.msra.mxu1 %v4010_v10 }
0x1f54   :  { %3924 = vmatprep.subr.mxu1 %v4043_v2 }
0x1f55   :  { %3925 = vmatpush3.msra.mxu1 %v4011_v18 }
0x1f56   :  { %3926 = vmatprep.subr.mxu1 %v4043_v2 }
0x1f57   :  { %3927 = vmatpush3.msra.mxu1 %v4012_v24 }
0x1f58   :  { %3942 = vmatprep.subr.mxu1 %v4043_v2 }
0x2010   :  { %v2971_v11 = vpop.f32.mrf.mxu1 }
0x2011   :  { %v2972_v12 = vadd.f32 %v2971_v11, %v4166_v27  ;;  %v4015_v27 = vld [vmem:[%s4744_s1 + $0x70] sm:$0xff] }
0x2012   :  { %v3908_v25 = vpop.f32.mrf.mxu1 }
0x2013   :  { %v2975_v17 = vmax.f32 %v2972_v12, 0.0 }
0x2015   :  { %3918 = vmatmul.mubr.msk.f32.vlgmr.msra.gmra.mxu0 %vm131_vm2, %v2975_v17 }
0x2016   :  { %3932 = vmatpush3.msra.mxu0 %v4013_v19  ;;  %3939 = vmatprep.mubr.msk.f32.mxu0 %vm4044_vm0, %v4043_v2 }
0x2017   :  { %3933 = vmatprep.subr.mxu0 %v4043_v2 }
0x2018   :  { %3934 = vmatpush3.msra.mxu0 %v4014_v20 }
0x2019   :  { %3935 = vmatprep.subr.mxu0 %v4043_v2 }
0x201a   :  { %3936 = vmatpush3.msra.mxu0 %v4015_v27 }
0x201b   :  { %3937 = vmatprep.subr.mxu0 %v4043_v2 }
0x201c   :  { %3938 = vmatpush3.msra.mxu0 %v4016_v8 }
0x20d5   :  { %v3045_v21 = vpop.f32.mrf.mxu0 }
0x20d6   :  { %v3046_v4 = vadd.f32 %v3045_v21, %v4209_v38  ;;  %v4019_v38 = vld [vmem:[%s4744_s1 + $0x90] sm:$0xff]  ;;  %s4046_s1 = smov [#allocation2]  }
0x20d7   :  { %v3919_v5 = vpop.f32.mrf.mxu0  ;;  %s3294_s0 = sshll.u32 %s4046_s1, 4  ;;  %s3295_s0 = int_to_ptr.vmem [resolvable:$true] %s3294_s0 }
0x20d8   :  { %v3049_v13 = vadd.f32 %v3046_v4, %v2898_v6  ;;  %p4026_p1 = scmp.lt.s32.totalorder %s3295_s0, %s3295_s0 }
0x20da   :  { %v3050_v14 = vmax.f32 %v3049_v13, 0.0 }
0x20dc   :  { %3929 = vmatmul.mubr.msk.f32.vlgmr.msra.gmra.mxu1 %vm131_vm2, %v3050_v14 }
0x20dd   :  { %3943 = vmatpush3.msra.mxu1 %v4017_v15  ;;  %3950 = vmatprep.mubr.msk.f32.mxu1 %vm4044_vm0, %v4043_v2 }
0x20de   :  { %3944 = vmatprep.subr.mxu1 %v4043_v2 }
0x20df   :  { %3945 = vmatpush3.msra.mxu1 %v4018_v32 }
0x20e0   :  { %3946 = vmatprep.subr.mxu1 %v4043_v2 }
0x20e1   :  { %3947 = vmatpush3.msra.mxu1 %v4019_v38 }
0x20e2   :  { %3948 = vmatprep.subr.mxu1 %v4043_v2 }
0x20e3   :  { %3949 = vmatpush3.msra.mxu1 %v4020_v33 }
0x219c   :  { %v3120_v34 = vpop.f32.mrf.mxu1 }
0x219d   :  { %v3121_v35 = vadd.f32 %v3120_v34, %v4245_v49 }
0x219e   :  { %v3930_v36 = vpop.f32.mrf.mxu1 }
0x219f   :  { %v3124_v22 = vmax.f32 %v3121_v35, 0.0 }
0x21a1   :  { %3940 = vmatmul.mubr.msk.f32.vlgmr.msra.gmra.mxu0 %vm131_vm2, %v3124_v22 }
0x2261   :  { %v3194_v44 = vpop.f32.mrf.mxu0 }
0x2262   :  { %v3195_v45 = vadd.f32 %v3194_v44, %v4276_v58 }
0x2263   :  { %v3941_v46 = vpop.f32.mrf.mxu0 }
0x2264   :  { %v3198_v47 = vadd.f32 %v3195_v45, %v3049_v13 }
0x2266   :  { %3951 = vmatmul.mubr.msk.f32.vlgmr.msra.gmra.mxu1 %vm131_vm2, %v3198_v47 }
0x2326   :  { %v3268_v2 = vpop.f32.mrf.mxu1 }
0x2327   :  { %v3269_v54 = vadd.f32 %v3268_v2, %v4292_v1 }
0x2328   :  { %v3952_v55 = vpop.f32.mrf.mxu1 }
0x2329   :  { %3281 = vrot.lane.b32.xlu0 %v3269_v54, %s4045_s29  ;;  %v3272_v56 = vadd.f32 2.0, %v3269_v54  ;;  %s4021_s29 = scalar_lea.vmem %s3295_s0, 128 }
0x232a   :  { %p4022_p0 = scmp.ne.s32.totalorder %s3295_s0, %s4021_s29  ;;  %p4027_p2 = scmp.lt.s32.totalorder %s4021_s29, %s4021_s29 }
0x232b   :  { %v3273_v26 = vsub.f32 0.0, %v3272_v56 }
0x232c   :  { %p4028_p3 = por %p4027_p2, %p4026_p1 }
0x232d   :  { %v3274_v49 = vmul.f32 1.442695, %v3273_v26 }
0x232e   :  { %p4029_p4 = pnand %p4028_p3, %p4022_p0 }
0x232f   :  { %3993 = vpow2.f32 %v3274_v49 }
0x233c   :  { %v3994_v28 = vpop.eup %3993 }
0x233d   :  { %v3276_v3 = vadd.f32 1.0, %v3994_v28 }
0x233f   :  { %3995 = vrcp.f32 %v3276_v3 }
0x234c   :  { %v3996_v29 = vpop.eup %3995 }
0x234d   :  { %v3279_v30 = vadd.f32 0.001, %v3996_v29 }
0x234f   :  { %3997 = vrcp.f32 %v3279_v30 }
0x235c   :  { %v3998_v37 = vpop.eup %3997 }
0x239b   :  { %v3282_v58 = vpop.permute.xlu0 %3281 }
0x239c   :  { %v3284_v31 = vsub.f32 %v4654_v57, %v3282_v58 }
0x239e   :  { %v3286_v1 = vmul.f32 %v3998_v37, %v3284_v31 }
0x23a0   :  { %3287 = vst.msk [vmem:[#allocation2] sm:$0xff] %vm52_vm1, %v3286_v1 }
0x23a1   :  { %4032 = shalt.err (!%p4029_p4)
}
0x23a2   :  { %3297 = dma.vmem_to_hbm [thread:$0]  %s3295_s0, 128, %s4746_s3, [#allocation3]  }
0x23a3   :  { %4041 = dma.done.wait [#allocation3], 128  }
0x23a4   :  { %4042 = vsyncadd [#allocation3], 4294967168 }
0x23a5   :  { %3301 = vsyncpa [#allocation3], 1 }

</bundles_post_ra>
